<compile_context>
chip_gen: v7x
topology: tpu7x:2x2x1
jax: 0.10.0
libtpu: 0.0.40
codegen_flags: <defaults>
</compile_context>

<pallas_src>
import math
from functools import partial

import jax
import jax.numpy as jnp
from jax import lax
from jax.experimental import pallas as pl
from jax.experimental.pallas import tpu as pltpu

_VMEM_LIMIT = 48 * 1024 * 1024   # explicit scoped-VMEM budget (safe on v5e/v6e/v7x)


# ------------------------------ in-kernel math ------------------------------

def _gelu_erf(x):
    # Exact (erf-based) GELU.  erf via Abramowitz–Stegun 7.1.26 (|err| < 1.5e-7),
    # built only from exp / mul / add / div so it always lowers on Mosaic.
    z = x * 0.7071067811865476
    sgn = jnp.where(z >= 0.0, 1.0, -1.0).astype(jnp.float32)
    az = jnp.abs(z)
    t = 1.0 / (1.0 + 0.3275911 * az)
    poly = ((((1.061405429 * t - 1.453152027) * t + 1.421413741) * t
             - 0.284496736) * t + 0.254829592) * t
    erf = sgn * (1.0 - poly * jnp.exp(-az * az))
    return 0.5 * x * (1.0 + erf)


def _layernorm(y, g, b):
    # torch.nn.LayerNorm: biased variance, eps = 1e-5, f32 math.
    mu = jnp.mean(y, axis=-1, keepdims=True)
    yc = y - mu
    var = jnp.mean(yc * yc, axis=-1, keepdims=True)
    return yc * lax.rsqrt(var + 1e-5) * g + b


# ------------------------------ Pallas kernels ------------------------------

def _attn_block_kernel(x_ref, wqkv_ref, bqkv_ref, wo_ref, bo_ref, g_ref, b_ref,
                       o_ref, *, nhead, use_mask):
    """Fused: LayerNorm1(x + OutProj(SelfAttention(QKV(x)))) for Bb sequences."""
    Bb, T, E = x_ref.shape
    Dh = E // nhead
    M = Bb * T

    xb = x_ref[...].reshape(M, E)                      # [M, E] bf16 rows slab

    # Head-fused QKV projection; q-scale (Dh^-0.5) is folded into wqkv at init.
    qkv = jnp.dot(xb, wqkv_ref[...],
                  preferred_element_type=jnp.float32) + bqkv_ref[...]   # [M, 3E] f32

    if use_mask:
        ri = lax.broadcasted_iota(jnp.int32, (Bb, T, T), 1)   # query index
        ci = lax.broadcasted_iota(jnp.int32, (Bb, T, T), 2)   # key index
        allow = ci <= ri

    ctx_heads = []
    for h in range(nhead):                             # static loop, small matmuls only
        q = qkv[:, h * Dh:(h + 1) * Dh].reshape(Bb, T, Dh).astype(jnp.bfloat16)
        k = qkv[:, E + h * Dh:E + (h + 1) * Dh].reshape(Bb, T, Dh).astype(jnp.bfloat16)
        v = qkv[:, 2 * E + h * Dh:2 * E + (h + 1) * Dh].reshape(Bb, T, Dh) \
              .astype(jnp.bfloat16)

        s = jnp.einsum('btd,bsd->bts', q, k,
                       preferred_element_type=jnp.float32)    # [Bb, T, T]
        if use_mask:
            s = jnp.where(allow, s, -1e30)
        s = s - jnp.max(s, axis=-1, keepdims=True)
        p = jnp.exp(s)
        p = p * pl.reciprocal(jnp.sum(p, axis=-1, keepdims=True), approx=True)

        ctx_heads.append(jnp.einsum('bts,bsd->btd', p.astype(jnp.bfloat16), v,
                                    preferred_element_type=jnp.float32))  # [Bb, T, Dh]

    ctx = jnp.concatenate(ctx_heads, axis=-1).reshape(M, E)    # [M, E] f32

    # Single head-fused output projection.
    attn = jnp.dot(ctx.astype(jnp.bfloat16), wo_ref[...],
                   preferred_element_type=jnp.float32) + bo_ref[...]     # [M, E]

    y = xb.astype(jnp.float32) + attn                  # residual in f32
    o_ref[...] = _layernorm(y, g_ref[...], b_ref[...]) \
        .reshape(Bb, T, E).astype(o_ref.dtype)


def _ffn_block_kernel(h_ref, w1_ref, b1_ref, w2_ref, b2_ref, g_ref, b_ref, o_ref):
    """Fused: LayerNorm2(h + W2 @ GELU(W1 @ h)).  Hidden activation stays in VMEM."""
    hb = h_ref[...]                                                   # [tm, E] bf16
    ff1 = jnp.dot(hb, w1_ref[...],
                  preferred_element_type=jnp.float32) + b1_ref[...]   # [tm, F] f32
    act = _gelu_erf(ff1)
    ff2 = jnp.dot(act.astype(jnp.bfloat16), w2_ref[...],
                  preferred_element_type=jnp.float32) + b2_ref[...]   # [tm, E] f32
    o_ref[...] = _layernorm(hb.astype(jnp.float32) + ff2,
                            g_ref[...], b_ref[...]).astype(o_ref.dtype)


def _matmul_bias_kernel(x_ref, w_ref, b_ref, o_ref):
    o_ref[...] = jnp.dot(x_ref[...], w_ref[...],
                         preferred_element_type=jnp.float32) + b_ref[...]


# ------------------------------ kernel wrappers -----------------------------

def _row_tile(M, cap=512):
    """Largest row tile <= cap that divides M (multiple of 8 unless it is M itself)."""
    if M <= cap:
        return M
    tm = (cap // 8) * 8
    while tm >= 8 and M % tm:
        tm -= 8
    return tm if tm >= 8 and M % tm == 0 else M


def attention_block(x, lp, nhead, use_mask):
    """x: [B, T, E] bf16 -> LayerNorm1(x + SelfAttention(x)) : [B, T, E] bf16."""
    B, T, E = x.shape
    # Pack multiple sequences per grid step so the MXU M dimension sees >= ~256 rows.
    bb = min(B, max(1, 256 // T)) if T <= 256 else 1
    while B % bb:
        bb -= 1
    kernel = partial(_attn_block_kernel, nhead=nhead, use_mask=use_mask)
    return pl.pallas_call(
        kernel,
        out_shape=jax.ShapeDtypeStruct((B, T, E), jnp.bfloat16),
        grid=(B // bb,),
        in_specs=[
            pl.BlockSpec((bb, T, E), lambda i: (i, 0, 0)),    # x (bb sequences)
            pl.BlockSpec((E, 3 * E), lambda i: (0, 0)),       # wqkv (q-scale folded)
            pl.BlockSpec((1, 3 * E), lambda i: (0, 0)),       # bqkv
            pl.BlockSpec((E, E), lambda i: (0, 0)),           # wo
            pl.BlockSpec((1, E), lambda i: (0, 0)),           # bo
            pl.BlockSpec((1, E), lambda i: (0, 0)),           # ln1 gamma
            pl.BlockSpec((1, E), lambda i: (0, 0)),           # ln1 beta
        ],
        out_specs=pl.BlockSpec((bb, T, E), lambda i: (i, 0, 0)),
        compiler_params=pltpu.CompilerParams(
            dimension_semantics=("parallel",),
            vmem_limit_bytes=_VMEM_LIMIT),
    )(x, lp["wqkv"], lp["bqkv"], lp["wo"], lp["bo"], lp["ln1_g"], lp["ln1_b"])


def ffn_block(h2d, lp):
    """h2d: [M, E] bf16 -> LayerNorm2(h + FFN(h)) : [M, E] bf16 (tiled over rows)."""
    M, E = h2d.shape
    F = lp["w1"].shape[1]
    tm = _row_tile(M, 512)
    return pl.pallas_call(
        _ffn_block_kernel,
        out_shape=jax.ShapeDtypeStruct((M, E), jnp.bfloat16),
        grid=(M // tm,),
        in_specs=[
            pl.BlockSpec((tm, E), lambda i: (i, 0)),
            pl.BlockSpec((E, F), lambda i: (0, 0)),
            pl.BlockSpec((1, F), lambda i: (0, 0)),
            pl.BlockSpec((F, E), lambda i: (0, 0)),
            pl.BlockSpec((1, E), lambda i: (0, 0)),
            pl.BlockSpec((1, E), lambda i: (0, 0)),
            pl.BlockSpec((1, E), lambda i: (0, 0)),
        ],
        out_specs=pl.BlockSpec((tm, E), lambda i: (i, 0)),
        compiler_params=pltpu.CompilerParams(
            dimension_semantics=("parallel",),
            vmem_limit_bytes=_VMEM_LIMIT),
    )(h2d, lp["w1"], lp["b1"], lp["w2"], lp["b2"], lp["ln2_g"], lp["ln2_b"])


def decoder_matmul(x2d, w, b):
    """x2d: [M, K] bf16, w: [K, Npad] bf16 (Npad multiple of 128), b: [1, Npad] f32."""
    M, K = x2d.shape
    N = w.shape[1]
    tm = _row_tile(M, 512)
    tn = min(N, 512)
    tn -= tn % 128
    while tn > 0 and N % tn:
        tn -= 128
    tn = tn if tn > 0 else N
    return pl.pallas_call(
        _matmul_bias_kernel,
        out_shape=jax.ShapeDtypeStruct((M, N), jnp.float32),
        grid=(M // tm, N // tn),
        in_specs=[
            pl.BlockSpec((tm, K), lambda i, j: (i, 0)),
            pl.BlockSpec((K, tn), lambda i, j: (0, j)),
            pl.BlockSpec((1, tn), lambda i, j: (0, j)),
        ],
        out_specs=pl.BlockSpec((tm, tn), lambda i, j: (i, j)),
        compiler_params=pltpu.CompilerParams(
            dimension_semantics=("parallel", "parallel"),
            vmem_limit_bytes=_VMEM_LIMIT),
    )(x2d, w, b)


# --------------------------------- model glue --------------------------------

def positional_encoding(T, d_model):
    pos = jnp.arange(T, dtype=jnp.float32)[:, None]
    div = jnp.exp(
        jnp.arange(0, d_model, 2, dtype=jnp.float32) * (-math.log(10000.0) / d_model))
    pe = jnp.zeros((T, d_model), jnp.float32)
    pe = pe.at[:, 0::2].set(jnp.sin(pos * div))
    pe = pe.at[:, 1::2].set(jnp.cos(pos * div))
    return pe[:, None, :]                                      # [T, 1, d_model]


def transformer_model(params, src, nhead, has_mask=True):
    """src: [T, B] int32 token ids -> logits [T, B, ntoken] f32."""
    T, B = src.shape
    ntoken, ninp = params["embed"].shape

    # embedding gather + positional encoding (one-time XLA glue), then bf16 stream
    x = jnp.take(params["embed"], src, axis=0) * math.sqrt(ninp)   # [T, B, E] f32
    x = x + positional_encoding(T, ninp)
    x = jnp.transpose(x, (1, 0, 2)).astype(jnp.bfloat16)           # [B, T, E] bf16

    for lp in params["layers"]:
        h = attention_block(x, lp, nhead, has_mask)                # attn + add&LN1
        x = ffn_block(h.reshape(B * T, ninp), lp).reshape(B, T, ninp)  # FFN + add&LN2

    # Transpose the SMALL [B,T,E] activation (not the [*,Npad] logits) to seq-major.
    xt = jnp.transpose(x, (1, 0, 2)).reshape(T * B, ninp)          # [T*B, E] bf16
    logits = decoder_matmul(xt, params["dec_w"], params["dec_b"])  # [T*B, Npad] f32
    return logits.reshape(T, B, -1)[:, :, :ntoken]                 # [T, B, ntoken]


# ------------------------------ parameter init -------------------------------

def init_params(key, ntoken, ninp, nhead, nhid, nlayers):
    E, H, F = ninp, nhead, nhid
    Dh = E // H
    scale = Dh ** -0.5
    npad = ((ntoken + 127) // 128) * 128           # lane-dense decoder output
    keys = iter(jax.random.split(key, 2 + nlayers * 6))

    def u(shape, bound):
        return jax.random.uniform(next(keys), shape, jnp.float32, -bound, bound)

    dec_w_t = u((ntoken, E), 0.1)                  # nn.Linear weight [ntoken, ninp]
    params = {
        "embed": u((ntoken, E), 0.1),              # nn.Embedding weight
        "dec_w": jnp.zeros((E, npad), jnp.float32)
                    .at[:, :ntoken].set(dec_w_t.T).astype(jnp.bfloat16),
        "dec_b": jnp.zeros((1, npad), jnp.float32),
        "layers": [],
    }

    for li in range(nlayers):
        # qkv_net: xavier_uniform on [3E, E].  Kept head-fused as [E, 3E]; the
        # q-scale Dh^-0.5 is folded into the first E columns (bias is zero).
        w_qkv = u((3 * E, E), math.sqrt(6.0 / (4.0 * E)))
        wqkv = w_qkv.T.at[:, :E].multiply(scale)   # [E, 3E], q pre-scaled
        w_o = u((E, E), 1.0 / math.sqrt(E))

        w1 = u((E, F), 1.0 / math.sqrt(E))         # feed-forward in -> hidden
        w2 = u((F, E), 1.0 / math.sqrt(F))         # feed-forward hidden -> in
        if li == 0:   # Bayes layer: F.linear without bias
            b1 = jnp.zeros((1, F), jnp.float32)
            b2 = jnp.zeros((1, E), jnp.float32)
        else:
            b1 = u((1, F), 1.0 / math.sqrt(E))
            b2 = u((1, E), 1.0 / math.sqrt(F))

        params["layers"].append(dict(
            wqkv=wqkv.astype(jnp.bfloat16),
            bqkv=jnp.zeros((1, 3 * E), jnp.float32),   # torch inits qkv bias to 0
            wo=w_o.T.astype(jnp.bfloat16),
            bo=jnp.zeros((1, E), jnp.float32),         # o_net bias init to 0
            ln1_g=jnp.ones((1, E), jnp.float32), ln1_b=jnp.zeros((1, E), jnp.float32),
            w1=w1.astype(jnp.bfloat16), b1=b1,
            w2=w2.astype(jnp.bfloat16), b2=b2,
            ln2_g=jnp.ones((1, E), jnp.float32), ln2_b=jnp.zeros((1, E), jnp.float32),
        ))
    return params


# ----------------------------------- main -------------------------------------

if __name__ == "__main__":
    ntoken, ninp, nhead, nhid, nlayers = 50, 32, 4, 64, 2
    seq_len, batch = 8, 2

    key = jax.random.PRNGKey(0)
    pkey, dkey = jax.random.split(key)
    params = init_params(pkey, ntoken, ninp, nhead, nhid, nlayers)
    src = jax.random.randint(dkey, (seq_len, batch), 0, ntoken, dtype=jnp.int32)

    fwd = jax.jit(partial(transformer_model, nhead=nhead))
    out = jax.block_until_ready(fwd(params, src))

    assert out.shape == (seq_len, batch, ntoken), out.shape
    assert out.dtype == jnp.float32
    assert bool(jnp.all(jnp.isfinite(out)))
    print("KERNEL_OK")
</pallas_src>

<mosaic_0001>
module attributes {stable_mosaic.version = 11 : i64} {
  func.func @_attn_block_kernel(%arg0: i32, %arg1: memref<2x8x32xbf16, #tpu.memory_space<vmem>>, %arg2: memref<32x96xbf16, #tpu.memory_space<vmem>>, %arg3: memref<1x96xf32, #tpu.memory_space<vmem>>, %arg4: memref<32x32xbf16, #tpu.memory_space<vmem>>, %arg5: memref<1x32xf32, #tpu.memory_space<vmem>>, %arg6: memref<1x32xf32, #tpu.memory_space<vmem>>, %arg7: memref<1x32xf32, #tpu.memory_space<vmem>>, %arg8: memref<2x8x32xbf16, #tpu.memory_space<vmem>>) attributes {dimension_semantics = [#tpu.dimension_semantics<parallel>], iteration_bounds = array<i64: 1>, scalar_prefetch = 0 : i64, scratch_operands = 0 : i64, tpu.core_type = #tpu.core_type<tc>, window_params = [{transform_indices = @transform_0, window_bounds = array<i64: 2, 8, 32>}, {pipeline_mode = #tpu.pipeline_mode<synchronous>, transform_indices = @transform_1, window_bounds = array<i64: 32, 96>}, {pipeline_mode = #tpu.pipeline_mode<synchronous>, transform_indices = @transform_2, window_bounds = array<i64: 1, 96>}, {pipeline_mode = #tpu.pipeline_mode<synchronous>, transform_indices = @transform_3, window_bounds = array<i64: 32, 32>}, {pipeline_mode = #tpu.pipeline_mode<synchronous>, transform_indices = @transform_4, window_bounds = array<i64: 1, 32>}, {pipeline_mode = #tpu.pipeline_mode<synchronous>, transform_indices = @transform_5, window_bounds = array<i64: 1, 32>}, {pipeline_mode = #tpu.pipeline_mode<synchronous>, transform_indices = @transform_6, window_bounds = array<i64: 1, 32>}, {transform_indices = @transform_7, window_bounds = array<i64: 2, 8, 32>}]} {
    %c0 = arith.constant 0 : index
    %c0_0 = arith.constant 0 : index
    %c0_1 = arith.constant 0 : index
    %0 = vector.load %arg1[%c0, %c0_0, %c0_1] : memref<2x8x32xbf16, #tpu.memory_space<vmem>>, vector<2x8x32xbf16>
    %1 = vector.shape_cast %0 : vector<2x8x32xbf16> to vector<16x32xbf16>
    %c0_2 = arith.constant 0 : index
    %c0_3 = arith.constant 0 : index
    %2 = vector.load %arg2[%c0_2, %c0_3] : memref<32x96xbf16, #tpu.memory_space<vmem>>, vector<32x96xbf16>
    %cst = arith.constant dense<0.000000e+00> : vector<16x96xf32>
    %3 = tpu.matmul %1, %2, %cst {dimension_numbers = #tpu.dot_dimension_numbers<[1], [0], [0], [1], [0, 0, 1, 1], [], []>} : vector<16x32xbf16>, vector<32x96xbf16>, vector<16x96xf32> -> vector<16x96xf32>
    %c0_4 = arith.constant 0 : index
    %c0_5 = arith.constant 0 : index
    %4 = vector.load %arg3[%c0_4, %c0_5] : memref<1x96xf32, #tpu.memory_space<vmem>>, vector<1x96xf32>
    %5 = vector.broadcast %4 : vector<1x96xf32> to vector<16x96xf32>
    %6 = arith.addf %3, %5 : vector<16x96xf32>
    %7 = tpu.iota {dimensions = array<i32: 1>} : vector<2x8x8xi32>
    %8 = tpu.iota {dimensions = array<i32: 2>} : vector<2x8x8xi32>
    %9 = arith.cmpi sle, %8, %7 : vector<2x8x8xi32>
    %10 = vector.extract_strided_slice %6 {offsets = [0, 0], sizes = [16, 8], strides = [1, 1]} : vector<16x96xf32> to vector<16x8xf32>
    %11 = vector.shape_cast %10 : vector<16x8xf32> to vector<2x8x8xf32>
    %12 = arith.truncf %11 : vector<2x8x8xf32> to vector<2x8x8xbf16>
    %13 = vector.extract_strided_slice %6 {offsets = [0, 32], sizes = [16, 8], strides = [1, 1]} : vector<16x96xf32> to vector<16x8xf32>
    %14 = vector.shape_cast %13 : vector<16x8xf32> to vector<2x8x8xf32>
    %15 = arith.truncf %14 : vector<2x8x8xf32> to vector<2x8x8xbf16>
    %16 = vector.extract_strided_slice %6 {offsets = [0, 64], sizes = [16, 8], strides = [1, 1]} : vector<16x96xf32> to vector<16x8xf32>
    %17 = vector.shape_cast %16 : vector<16x8xf32> to vector<2x8x8xf32>
    %18 = arith.truncf %17 : vector<2x8x8xf32> to vector<2x8x8xbf16>
    "tpu.trace_start"() <{level = 10 : i32, message = "btd,bsd->bts"}> : () -> ()
    %cst_6 = arith.constant dense<0.000000e+00> : vector<2x8x8xf32>
    %19 = tpu.matmul %12, %15, %cst_6 {dimension_numbers = #tpu.dot_dimension_numbers<[2], [2], [1], [1], [0, 0, 0, 1, 1, 1], [0], [0]>} : vector<2x8x8xbf16>, vector<2x8x8xbf16>, vector<2x8x8xf32> -> vector<2x8x8xf32>
    %cst_7 = arith.constant -1.000000e+30 : f32
    "tpu.trace_stop"() : () -> ()
    %20 = vector.broadcast %cst_7 : f32 to vector<2x8x8xf32>
    %21 = arith.select %9, %19, %20 : vector<2x8x8xi1>, vector<2x8x8xf32>
    %cst_8 = arith.constant dense<0xFF800000> : vector<2x8xf32>
    %22 = vector.multi_reduction <maximumf>, %21, %cst_8 [2] : vector<2x8x8xf32> to vector<2x8xf32>
    %23 = vector.shape_cast %22 : vector<2x8xf32> to vector<2x8x1xf32>
    %24 = vector.broadcast %23 : vector<2x8x1xf32> to vector<2x8x8xf32>
    %25 = arith.subf %21, %24 : vector<2x8x8xf32>
    %26 = math.exp %25 : vector<2x8x8xf32>
    %cst_9 = arith.constant dense<0.000000e+00> : vector<2x8xf32>
    %27 = vector.multi_reduction <add>, %26, %cst_9 [2] : vector<2x8x8xf32> to vector<2x8xf32>
    %28 = vector.shape_cast %27 : vector<2x8xf32> to vector<2x8x1xf32>
    %29 = tpu.reciprocal %28 {approx = true} : vector<2x8x1xf32> -> vector<2x8x1xf32>
    %30 = vector.broadcast %29 : vector<2x8x1xf32> to vector<2x8x8xf32>
    %31 = arith.mulf %26, %30 : vector<2x8x8xf32>
    %32 = arith.truncf %31 : vector<2x8x8xf32> to vector<2x8x8xbf16>
    "tpu.trace_start"() <{level = 10 : i32, message = "bts,bsd->btd"}> : () -> ()
    %cst_10 = arith.constant dense<0.000000e+00> : vector<2x8x8xf32>
    %33 = tpu.matmul %32, %18, %cst_10 {dimension_numbers = #tpu.dot_dimension_numbers<[2], [1], [1], [2], [0, 0, 0, 1, 1, 2], [0], [0]>} : vector<2x8x8xbf16>, vector<2x8x8xbf16>, vector<2x8x8xf32> -> vector<2x8x8xf32>
    "tpu.trace_stop"() : () -> ()
    %34 = vector.extract_strided_slice %6 {offsets = [0, 8], sizes = [16, 8], strides = [1, 1]} : vector<16x96xf32> to vector<16x8xf32>
    %35 = vector.shape_cast %34 : vector<16x8xf32> to vector<2x8x8xf32>
    %36 = arith.truncf %35 : vector<2x8x8xf32> to vector<2x8x8xbf16>
    %37 = vector.extract_strided_slice %6 {offsets = [0, 40], sizes = [16, 8], strides = [1, 1]} : vector<16x96xf32> to vector<16x8xf32>
    %38 = vector.shape_cast %37 : vector<16x8xf32> to vector<2x8x8xf32>
    %39 = arith.truncf %38 : vector<2x8x8xf32> to vector<2x8x8xbf16>
    %40 = vector.extract_strided_slice %6 {offsets = [0, 72], sizes = [16, 8], strides = [1, 1]} : vector<16x96xf32> to vector<16x8xf32>
    %41 = vector.shape_cast %40 : vector<16x8xf32> to vector<2x8x8xf32>
    %42 = arith.truncf %41 : vector<2x8x8xf32> to vector<2x8x8xbf16>
    "tpu.trace_start"() <{level = 10 : i32, message = "btd,bsd->bts"}> : () -> ()
    %cst_11 = arith.constant dense<0.000000e+00> : vector<2x8x8xf32>
    %43 = tpu.matmul %36, %39, %cst_11 {dimension_numbers = #tpu.dot_dimension_numbers<[2], [2], [1], [1], [0, 0, 0, 1, 1, 1], [0], [0]>} : vector<2x8x8xbf16>, vector<2x8x8xbf16>, vector<2x8x8xf32> -> vector<2x8x8xf32>
    %cst_12 = arith.constant -1.000000e+30 : f32
    "tpu.trace_stop"() : () -> ()
    %44 = vector.broadcast %cst_12 : f32 to vector<2x8x8xf32>
    %45 = arith.select %9, %43, %44 : vector<2x8x8xi1>, vector<2x8x8xf32>
    %cst_13 = arith.constant dense<0xFF800000> : vector<2x8xf32>
    %46 = vector.multi_reduction <maximumf>, %45, %cst_13 [2] : vector<2x8x8xf32> to vector<2x8xf32>
    %47 = vector.shape_cast %46 : vector<2x8xf32> to vector<2x8x1xf32>
    %48 = vector.broadcast %47 : vector<2x8x1xf32> to vector<2x8x8xf32>
    %49 = arith.subf %45, %48 : vector<2x8x8xf32>
    %50 = math.exp %49 : vector<2x8x8xf32>
    %cst_14 = arith.constant dense<0.000000e+00> : vector<2x8xf32>
    %51 = vector.multi_reduction <add>, %50, %cst_14 [2] : vector<2x8x8xf32> to vector<2x8xf32>
    %52 = vector.shape_cast %51 : vector<2x8xf32> to vector<2x8x1xf32>
    %53 = tpu.reciprocal %52 {approx = true} : vector<2x8x1xf32> -> vector<2x8x1xf32>
    %54 = vector.broadcast %53 : vector<2x8x1xf32> to vector<2x8x8xf32>
    %55 = arith.mulf %50, %54 : vector<2x8x8xf32>
    %56 = arith.truncf %55 : vector<2x8x8xf32> to vector<2x8x8xbf16>
    "tpu.trace_start"() <{level = 10 : i32, message = "bts,bsd->btd"}> : () -> ()
    %cst_15 = arith.constant dense<0.000000e+00> : vector<2x8x8xf32>
    %57 = tpu.matmul %56, %42, %cst_15 {dimension_numbers = #tpu.dot_dimension_numbers<[2], [1], [1], [2], [0, 0, 0, 1, 1, 2], [0], [0]>} : vector<2x8x8xbf16>, vector<2x8x8xbf16>, vector<2x8x8xf32> -> vector<2x8x8xf32>
    "tpu.trace_stop"() : () -> ()
    %58 = vector.extract_strided_slice %6 {offsets = [0, 16], sizes = [16, 8], strides = [1, 1]} : vector<16x96xf32> to vector<16x8xf32>
    %59 = vector.shape_cast %58 : vector<16x8xf32> to vector<2x8x8xf32>
    %60 = arith.truncf %59 : vector<2x8x8xf32> to vector<2x8x8xbf16>
    %61 = vector.extract_strided_slice %6 {offsets = [0, 48], sizes = [16, 8], strides = [1, 1]} : vector<16x96xf32> to vector<16x8xf32>
    %62 = vector.shape_cast %61 : vector<16x8xf32> to vector<2x8x8xf32>
    %63 = arith.truncf %62 : vector<2x8x8xf32> to vector<2x8x8xbf16>
    %64 = vector.extract_strided_slice %6 {offsets = [0, 80], sizes = [16, 8], strides = [1, 1]} : vector<16x96xf32> to vector<16x8xf32>
    %65 = vector.shape_cast %64 : vector<16x8xf32> to vector<2x8x8xf32>
    %66 = arith.truncf %65 : vector<2x8x8xf32> to vector<2x8x8xbf16>
    "tpu.trace_start"() <{level = 10 : i32, message = "btd,bsd->bts"}> : () -> ()
    %cst_16 = arith.constant dense<0.000000e+00> : vector<2x8x8xf32>
    %67 = tpu.matmul %60, %63, %cst_16 {dimension_numbers = #tpu.dot_dimension_numbers<[2], [2], [1], [1], [0, 0, 0, 1, 1, 1], [0], [0]>} : vector<2x8x8xbf16>, vector<2x8x8xbf16>, vector<2x8x8xf32> -> vector<2x8x8xf32>
    %cst_17 = arith.constant -1.000000e+30 : f32
    "tpu.trace_stop"() : () -> ()
    %68 = vector.broadcast %cst_17 : f32 to vector<2x8x8xf32>
    %69 = arith.select %9, %67, %68 : vector<2x8x8xi1>, vector<2x8x8xf32>
    %cst_18 = arith.constant dense<0xFF800000> : vector<2x8xf32>
    %70 = vector.multi_reduction <maximumf>, %69, %cst_18 [2] : vector<2x8x8xf32> to vector<2x8xf32>
    %71 = vector.shape_cast %70 : vector<2x8xf32> to vector<2x8x1xf32>
    %72 = vector.broadcast %71 : vector<2x8x1xf32> to vector<2x8x8xf32>
    %73 = arith.subf %69, %72 : vector<2x8x8xf32>
    %74 = math.exp %73 : vector<2x8x8xf32>
    %cst_19 = arith.constant dense<0.000000e+00> : vector<2x8xf32>
    %75 = vector.multi_reduction <add>, %74, %cst_19 [2] : vector<2x8x8xf32> to vector<2x8xf32>
    %76 = vector.shape_cast %75 : vector<2x8xf32> to vector<2x8x1xf32>
    %77 = tpu.reciprocal %76 {approx = true} : vector<2x8x1xf32> -> vector<2x8x1xf32>
    %78 = vector.broadcast %77 : vector<2x8x1xf32> to vector<2x8x8xf32>
    %79 = arith.mulf %74, %78 : vector<2x8x8xf32>
    %80 = arith.truncf %79 : vector<2x8x8xf32> to vector<2x8x8xbf16>
    "tpu.trace_start"() <{level = 10 : i32, message = "bts,bsd->btd"}> : () -> ()
    %cst_20 = arith.constant dense<0.000000e+00> : vector<2x8x8xf32>
    %81 = tpu.matmul %80, %66, %cst_20 {dimension_numbers = #tpu.dot_dimension_numbers<[2], [1], [1], [2], [0, 0, 0, 1, 1, 2], [0], [0]>} : vector<2x8x8xbf16>, vector<2x8x8xbf16>, vector<2x8x8xf32> -> vector<2x8x8xf32>
    "tpu.trace_stop"() : () -> ()
    %82 = vector.extract_strided_slice %6 {offsets = [0, 24], sizes = [16, 8], strides = [1, 1]} : vector<16x96xf32> to vector<16x8xf32>
    %83 = vector.shape_cast %82 : vector<16x8xf32> to vector<2x8x8xf32>
    %84 = arith.truncf %83 : vector<2x8x8xf32> to vector<2x8x8xbf16>
    %85 = vector.extract_strided_slice %6 {offsets = [0, 56], sizes = [16, 8], strides = [1, 1]} : vector<16x96xf32> to vector<16x8xf32>
    %86 = vector.shape_cast %85 : vector<16x8xf32> to vector<2x8x8xf32>
    %87 = arith.truncf %86 : vector<2x8x8xf32> to vector<2x8x8xbf16>
    %88 = vector.extract_strided_slice %6 {offsets = [0, 88], sizes = [16, 8], strides = [1, 1]} : vector<16x96xf32> to vector<16x8xf32>
    %89 = vector.shape_cast %88 : vector<16x8xf32> to vector<2x8x8xf32>
    %90 = arith.truncf %89 : vector<2x8x8xf32> to vector<2x8x8xbf16>
    "tpu.trace_start"() <{level = 10 : i32, message = "btd,bsd->bts"}> : () -> ()
    %cst_21 = arith.constant dense<0.000000e+00> : vector<2x8x8xf32>
    %91 = tpu.matmul %84, %87, %cst_21 {dimension_numbers = #tpu.dot_dimension_numbers<[2], [2], [1], [1], [0, 0, 0, 1, 1, 1], [0], [0]>} : vector<2x8x8xbf16>, vector<2x8x8xbf16>, vector<2x8x8xf32> -> vector<2x8x8xf32>
    %cst_22 = arith.constant -1.000000e+30 : f32
    "tpu.trace_stop"() : () -> ()
    %92 = vector.broadcast %cst_22 : f32 to vector<2x8x8xf32>
    %93 = arith.select %9, %91, %92 : vector<2x8x8xi1>, vector<2x8x8xf32>
    %cst_23 = arith.constant dense<0xFF800000> : vector<2x8xf32>
    %94 = vector.multi_reduction <maximumf>, %93, %cst_23 [2] : vector<2x8x8xf32> to vector<2x8xf32>
    %95 = vector.shape_cast %94 : vector<2x8xf32> to vector<2x8x1xf32>
    %96 = vector.broadcast %95 : vector<2x8x1xf32> to vector<2x8x8xf32>
    %97 = arith.subf %93, %96 : vector<2x8x8xf32>
    %98 = math.exp %97 : vector<2x8x8xf32>
    %cst_24 = arith.constant dense<0.000000e+00> : vector<2x8xf32>
    %99 = vector.multi_reduction <add>, %98, %cst_24 [2] : vector<2x8x8xf32> to vector<2x8xf32>
    %100 = vector.shape_cast %99 : vector<2x8xf32> to vector<2x8x1xf32>
    %101 = tpu.reciprocal %100 {approx = true} : vector<2x8x1xf32> -> vector<2x8x1xf32>
    %102 = vector.broadcast %101 : vector<2x8x1xf32> to vector<2x8x8xf32>
    %103 = arith.mulf %98, %102 : vector<2x8x8xf32>
    %104 = arith.truncf %103 : vector<2x8x8xf32> to vector<2x8x8xbf16>
    "tpu.trace_start"() <{level = 10 : i32, message = "bts,bsd->btd"}> : () -> ()
    %cst_25 = arith.constant dense<0.000000e+00> : vector<2x8x8xf32>
    %105 = tpu.matmul %104, %90, %cst_25 {dimension_numbers = #tpu.dot_dimension_numbers<[2], [1], [1], [2], [0, 0, 0, 1, 1, 2], [0], [0]>} : vector<2x8x8xbf16>, vector<2x8x8xbf16>, vector<2x8x8xf32> -> vector<2x8x8xf32>
    "tpu.trace_stop"() : () -> ()
    %106 = tpu.concatenate %33, %57, %81, %105 in 2 : vector<2x8x8xf32>, vector<2x8x8xf32>, vector<2x8x8xf32>, vector<2x8x8xf32> -> vector<2x8x32xf32>
    %107 = vector.shape_cast %106 : vector<2x8x32xf32> to vector<16x32xf32>
    %108 = arith.truncf %107 : vector<16x32xf32> to vector<16x32xbf16>
    %c0_26 = arith.constant 0 : index
    %c0_27 = arith.constant 0 : index
    %109 = vector.load %arg4[%c0_26, %c0_27] : memref<32x32xbf16, #tpu.memory_space<vmem>>, vector<32x32xbf16>
    %cst_28 = arith.constant dense<0.000000e+00> : vector<16x32xf32>
    %110 = tpu.matmul %108, %109, %cst_28 {dimension_numbers = #tpu.dot_dimension_numbers<[1], [0], [0], [1], [0, 0, 1, 1], [], []>} : vector<16x32xbf16>, vector<32x32xbf16>, vector<16x32xf32> -> vector<16x32xf32>
    %c0_29 = arith.constant 0 : index
    %c0_30 = arith.constant 0 : index
    %111 = vector.load %arg5[%c0_29, %c0_30] : memref<1x32xf32, #tpu.memory_space<vmem>>, vector<1x32xf32>
    %112 = vector.broadcast %111 : vector<1x32xf32> to vector<16x32xf32>
    %113 = arith.addf %110, %112 : vector<16x32xf32>
    %114 = arith.extf %1 : vector<16x32xbf16> to vector<16x32xf32>
    %115 = arith.addf %114, %113 : vector<16x32xf32>
    %c0_31 = arith.constant 0 : index
    %c0_32 = arith.constant 0 : index
    %116 = vector.load %arg6[%c0_31, %c0_32] : memref<1x32xf32, #tpu.memory_space<vmem>>, vector<1x32xf32>
    %c0_33 = arith.constant 0 : index
    %c0_34 = arith.constant 0 : index
    %117 = vector.load %arg7[%c0_33, %c0_34] : memref<1x32xf32, #tpu.memory_space<vmem>>, vector<1x32xf32>
    %cst_35 = arith.constant dense<0.000000e+00> : vector<16xf32>
    %118 = vector.multi_reduction <add>, %115, %cst_35 [1] : vector<16x32xf32> to vector<16xf32>
    %119 = vector.shape_cast %118 : vector<16xf32> to vector<16x1xf32>
    %cst_36 = arith.constant 3.200000e+01 : f32
    %120 = vector.broadcast %cst_36 : f32 to vector<16x1xf32>
    %121 = arith.divf %119, %120 : vector<16x1xf32>
    %122 = vector.broadcast %121 : vector<16x1xf32> to vector<16x32xf32>
    %123 = arith.subf %115, %122 : vector<16x32xf32>
    %124 = arith.mulf %123, %123 : vector<16x32xf32>
    %cst_37 = arith.constant dense<0.000000e+00> : vector<16xf32>
    %125 = vector.multi_reduction <add>, %124, %cst_37 [1] : vector<16x32xf32> to vector<16xf32>
    %126 = vector.shape_cast %125 : vector<16xf32> to vector<16x1xf32>
    %cst_38 = arith.constant 3.200000e+01 : f32
    %127 = vector.broadcast %cst_38 : f32 to vector<16x1xf32>
    %128 = arith.divf %126, %127 : vector<16x1xf32>
    %cst_39 = arith.constant 9.99999974E-6 : f32
    %129 = vector.broadcast %cst_39 : f32 to vector<16x1xf32>
    %130 = arith.addf %128, %129 : vector<16x1xf32>
    %131 = math.rsqrt %130 : vector<16x1xf32>
    %132 = vector.broadcast %131 : vector<16x1xf32> to vector<16x32xf32>
    %133 = arith.mulf %123, %132 : vector<16x32xf32>
    %134 = vector.broadcast %116 : vector<1x32xf32> to vector<16x32xf32>
    %135 = arith.mulf %133, %134 : vector<16x32xf32>
    %136 = vector.broadcast %117 : vector<1x32xf32> to vector<16x32xf32>
    %137 = arith.addf %135, %136 : vector<16x32xf32>
    %138 = vector.shape_cast %137 : vector<16x32xf32> to vector<2x8x32xf32>
    %139 = arith.truncf %138 : vector<2x8x32xf32> to vector<2x8x32xbf16>
    %c0_40 = arith.constant 0 : index
    %c0_41 = arith.constant 0 : index
    %c0_42 = arith.constant 0 : index
    %140 = vector.load %arg8[%c0_40, %c0_41, %c0_42] : memref<2x8x32xbf16, #tpu.memory_space<vmem>>, vector<2x8x32xbf16>
    tpu.vector_store %arg8[%c0_40, %c0_41, %c0_42], %139 {strides = array<i32>} : memref<2x8x32xbf16, #tpu.memory_space<vmem>>, vector<2x8x32xbf16>,
    return
  }
  func.func @transform_0(%arg0: i32) -> (i32, i32, i32) {
    %c0_i32 = arith.constant 0 : i32
    %c0_i32_0 = arith.constant 0 : i32
    %c0_i32_1 = arith.constant 0 : i32
    return %arg0, %c0_i32, %c0_i32_0 : i32, i32, i32
  }
  func.func @transform_1(%arg0: i32) -> (i32, i32) {
    %c0_i32 = arith.constant 0 : i32
    %c0_i32_0 = arith.constant 0 : i32
    %c0_i32_1 = arith.constant 0 : i32
    return %c0_i32, %c0_i32_0 : i32, i32
  }
  func.func @transform_2(%arg0: i32) -> (i32, i32) {
    %c0_i32 = arith.constant 0 : i32
    %c0_i32_0 = arith.constant 0 : i32
    %c0_i32_1 = arith.constant 0 : i32
    return %c0_i32, %c0_i32_0 : i32, i32
  }
  func.func @transform_3(%arg0: i32) -> (i32, i32) {
    %c0_i32 = arith.constant 0 : i32
    %c0_i32_0 = arith.constant 0 : i32
    %c0_i32_1 = arith.constant 0 : i32
    return %c0_i32, %c0_i32_0 : i32, i32
  }
  func.func @transform_4(%arg0: i32) -> (i32, i32) {
    %c0_i32 = arith.constant 0 : i32
    %c0_i32_0 = arith.constant 0 : i32
    %c0_i32_1 = arith.constant 0 : i32
    return %c0_i32, %c0_i32_0 : i32, i32
  }
  func.func @transform_5(%arg0: i32) -> (i32, i32) {
    %c0_i32 = arith.constant 0 : i32
    %c0_i32_0 = arith.constant 0 : i32
    %c0_i32_1 = arith.constant 0 : i32
    return %c0_i32, %c0_i32_0 : i32, i32
  }
  func.func @transform_6(%arg0: i32) -> (i32, i32) {
    %c0_i32 = arith.constant 0 : i32
    %c0_i32_0 = arith.constant 0 : i32
    %c0_i32_1 = arith.constant 0 : i32
    return %c0_i32, %c0_i32_0 : i32, i32
  }
  func.func @transform_7(%arg0: i32) -> (i32, i32, i32) {
    %c0_i32 = arith.constant 0 : i32
    %c0_i32_0 = arith.constant 0 : i32
    %c0_i32_1 = arith.constant 0 : i32
    return %arg0, %c0_i32, %c0_i32_0 : i32, i32, i32
  }
}

module attributes {stable_mosaic.version = 11 : i64} {
  func.func @_ffn_block_kernel(%arg0: i32, %arg1: memref<16x32xbf16, #tpu.memory_space<vmem>>, %arg2: memref<32x64xbf16, #tpu.memory_space<vmem>>, %arg3: memref<1x64xf32, #tpu.memory_space<vmem>>, %arg4: memref<64x32xbf16, #tpu.memory_space<vmem>>, %arg5: memref<1x32xf32, #tpu.memory_space<vmem>>, %arg6: memref<1x32xf32, #tpu.memory_space<vmem>>, %arg7: memref<1x32xf32, #tpu.memory_space<vmem>>, %arg8: memref<16x32xbf16, #tpu.memory_space<vmem>>) attributes {dimension_semantics = [#tpu.dimension_semantics<parallel>], iteration_bounds = array<i64: 1>, scalar_prefetch = 0 : i64, scratch_operands = 0 : i64, tpu.core_type = #tpu.core_type<tc>, window_params = [{transform_indices = @transform_0, window_bounds = array<i64: 16, 32>}, {pipeline_mode = #tpu.pipeline_mode<synchronous>, transform_indices = @transform_1, window_bounds = array<i64: 32, 64>}, {pipeline_mode = #tpu.pipeline_mode<synchronous>, transform_indices = @transform_2, window_bounds = array<i64: 1, 64>}, {pipeline_mode = #tpu.pipeline_mode<synchronous>, transform_indices = @transform_3, window_bounds = array<i64: 64, 32>}, {pipeline_mode = #tpu.pipeline_mode<synchronous>, transform_indices = @transform_4, window_bounds = array<i64: 1, 32>}, {pipeline_mode = #tpu.pipeline_mode<synchronous>, transform_indices = @transform_5, window_bounds = array<i64: 1, 32>}, {pipeline_mode = #tpu.pipeline_mode<synchronous>, transform_indices = @transform_6, window_bounds = array<i64: 1, 32>}, {transform_indices = @transform_7, window_bounds = array<i64: 16, 32>}]} {
    %c0 = arith.constant 0 : index
    %c0_0 = arith.constant 0 : index
    %0 = vector.load %arg1[%c0, %c0_0] : memref<16x32xbf16, #tpu.memory_space<vmem>>, vector<16x32xbf16>
    %c0_1 = arith.constant 0 : index
    %c0_2 = arith.constant 0 : index
    %1 = vector.load %arg2[%c0_1, %c0_2] : memref<32x64xbf16, #tpu.memory_space<vmem>>, vector<32x64xbf16>
    %cst = arith.constant dense<0.000000e+00> : vector<16x64xf32>
    %2 = tpu.matmul %0, %1, %cst {dimension_numbers = #tpu.dot_dimension_numbers<[1], [0], [0], [1], [0, 0, 1, 1], [], []>} : vector<16x32xbf16>, vector<32x64xbf16>, vector<16x64xf32> -> vector<16x64xf32>
    %c0_3 = arith.constant 0 : index
    %c0_4 = arith.constant 0 : index
    %3 = vector.load %arg3[%c0_3, %c0_4] : memref<1x64xf32, #tpu.memory_space<vmem>>, vector<1x64xf32>
    %4 = vector.broadcast %3 : vector<1x64xf32> to vector<16x64xf32>
    %5 = arith.addf %2, %4 : vector<16x64xf32>
    %cst_5 = arith.constant 0.707106769 : f32
    %6 = vector.broadcast %cst_5 : f32 to vector<16x64xf32>
    %7 = arith.mulf %5, %6 : vector<16x64xf32>
    %cst_6 = arith.constant 0.000000e+00 : f32
    %8 = vector.broadcast %cst_6 : f32 to vector<16x64xf32>
    %9 = arith.cmpf oge, %7, %8 : vector<16x64xf32>
    %cst_7 = arith.constant 1.000000e+00 : f32
    %cst_8 = arith.constant -1.000000e+00 : f32
    %10 = vector.broadcast %cst_7 : f32 to vector<16x64xf32>
    %11 = vector.broadcast %cst_8 : f32 to vector<16x64xf32>
    %12 = arith.select %9, %10, %11 : vector<16x64xi1>, vector<16x64xf32>
    %13 = math.absf %7 : vector<16x64xf32>
    %cst_9 = arith.constant 0.327591091 : f32
    %14 = vector.broadcast %cst_9 : f32 to vector<16x64xf32>
    %15 = arith.mulf %14, %13 : vector<16x64xf32>
    %cst_10 = arith.constant 1.000000e+00 : f32
    %16 = vector.broadcast %cst_10 : f32 to vector<16x64xf32>
    %17 = arith.addf %16, %15 : vector<16x64xf32>
    %cst_11 = arith.constant 1.000000e+00 : f32
    %18 = vector.broadcast %cst_11 : f32 to vector<16x64xf32>
    %19 = arith.divf %18, %17 : vector<16x64xf32>
    %cst_12 = arith.constant 1.06140542 : f32
    %20 = vector.broadcast %cst_12 : f32 to vector<16x64xf32>
    %21 = arith.mulf %20, %19 : vector<16x64xf32>
    %cst_13 = arith.constant 1.45315206 : f32
    %22 = vector.broadcast %cst_13 : f32 to vector<16x64xf32>
    %23 = arith.subf %21, %22 : vector<16x64xf32>
    %24 = arith.mulf %23, %19 : vector<16x64xf32>
    %cst_14 = arith.constant 1.42141378 : f32
    %25 = vector.broadcast %cst_14 : f32 to vector<16x64xf32>
    %26 = arith.addf %24, %25 : vector<16x64xf32>
    %27 = arith.mulf %26, %19 : vector<16x64xf32>
    %cst_15 = arith.constant 0.284496725 : f32
    %28 = vector.broadcast %cst_15 : f32 to vector<16x64xf32>
    %29 = arith.subf %27, %28 : vector<16x64xf32>
    %30 = arith.mulf %29, %19 : vector<16x64xf32>
    %cst_16 = arith.constant 0.254829586 : f32
    %31 = vector.broadcast %cst_16 : f32 to vector<16x64xf32>
    %32 = arith.addf %30, %31 : vector<16x64xf32>
    %33 = arith.mulf %32, %19 : vector<16x64xf32>
    %cst_17 = arith.constant 0.000000e+00 : f32
    %34 = vector.broadcast %cst_17 : f32 to vector<16x64xf32>
    %35 = arith.subf %34, %13 : vector<16x64xf32>
    %36 = arith.mulf %35, %13 : vector<16x64xf32>
    %37 = math.exp %36 : vector<16x64xf32>
    %38 = arith.mulf %33, %37 : vector<16x64xf32>
    %cst_18 = arith.constant 1.000000e+00 : f32
    %39 = vector.broadcast %cst_18 : f32 to vector<16x64xf32>
    %40 = arith.subf %39, %38 : vector<16x64xf32>
    %41 = arith.mulf %12, %40 : vector<16x64xf32>
    %cst_19 = arith.constant 5.000000e-01 : f32
    %42 = vector.broadcast %cst_19 : f32 to vector<16x64xf32>
    %43 = arith.mulf %42, %5 : vector<16x64xf32>
    %cst_20 = arith.constant 1.000000e+00 : f32
    %44 = vector.broadcast %cst_20 : f32 to vector<16x64xf32>
    %45 = arith.addf %44, %41 : vector<16x64xf32>
    %46 = arith.mulf %43, %45 : vector<16x64xf32>
    %47 = arith.truncf %46 : vector<16x64xf32> to vector<16x64xbf16>
    %c0_21 = arith.constant 0 : index
    %c0_22 = arith.constant 0 : index
    %48 = vector.load %arg4[%c0_21, %c0_22] : memref<64x32xbf16, #tpu.memory_space<vmem>>, vector<64x32xbf16>
    %cst_23 = arith.constant dense<0.000000e+00> : vector<16x32xf32>
    %49 = tpu.matmul %47, %48, %cst_23 {dimension_numbers = #tpu.dot_dimension_numbers<[1], [0], [0], [1], [0, 0, 1, 1], [], []>} : vector<16x64xbf16>, vector<64x32xbf16>, vector<16x32xf32> -> vector<16x32xf32>
    %c0_24 = arith.constant 0 : index
    %c0_25 = arith.constant 0 : index
    %50 = vector.load %arg5[%c0_24, %c0_25] : memref<1x32xf32, #tpu.memory_space<vmem>>, vector<1x32xf32>
    %51 = vector.broadcast %50 : vector<1x32xf32> to vector<16x32xf32>
    %52 = arith.addf %49, %51 : vector<16x32xf32>
    %53 = arith.extf %0 : vector<16x32xbf16> to vector<16x32xf32>
    %54 = arith.addf %53, %52 : vector<16x32xf32>
    %c0_26 = arith.constant 0 : index
    %c0_27 = arith.constant 0 : index
    %55 = vector.load %arg6[%c0_26, %c0_27] : memref<1x32xf32, #tpu.memory_space<vmem>>, vector<1x32xf32>
    %c0_28 = arith.constant 0 : index
    %c0_29 = arith.constant 0 : index
    %56 = vector.load %arg7[%c0_28, %c0_29] : memref<1x32xf32, #tpu.memory_space<vmem>>, vector<1x32xf32>
    %cst_30 = arith.constant dense<0.000000e+00> : vector<16xf32>
    %57 = vector.multi_reduction <add>, %54, %cst_30 [1] : vector<16x32xf32> to vector<16xf32>
    %58 = vector.shape_cast %57 : vector<16xf32> to vector<16x1xf32>
    %cst_31 = arith.constant 3.200000e+01 : f32
    %59 = vector.broadcast %cst_31 : f32 to vector<16x1xf32>
    %60 = arith.divf %58, %59 : vector<16x1xf32>
    %61 = vector.broadcast %60 : vector<16x1xf32> to vector<16x32xf32>
    %62 = arith.subf %54, %61 : vector<16x32xf32>
    %63 = arith.mulf %62, %62 : vector<16x32xf32>
    %cst_32 = arith.constant dense<0.000000e+00> : vector<16xf32>
    %64 = vector.multi_reduction <add>, %63, %cst_32 [1] : vector<16x32xf32> to vector<16xf32>
    %65 = vector.shape_cast %64 : vector<16xf32> to vector<16x1xf32>
    %cst_33 = arith.constant 3.200000e+01 : f32
    %66 = vector.broadcast %cst_33 : f32 to vector<16x1xf32>
    %67 = arith.divf %65, %66 : vector<16x1xf32>
    %cst_34 = arith.constant 9.99999974E-6 : f32
    %68 = vector.broadcast %cst_34 : f32 to vector<16x1xf32>
    %69 = arith.addf %67, %68 : vector<16x1xf32>
    %70 = math.rsqrt %69 : vector<16x1xf32>
    %71 = vector.broadcast %70 : vector<16x1xf32> to vector<16x32xf32>
    %72 = arith.mulf %62, %71 : vector<16x32xf32>
    %73 = vector.broadcast %55 : vector<1x32xf32> to vector<16x32xf32>
    %74 = arith.mulf %72, %73 : vector<16x32xf32>
    %75 = vector.broadcast %56 : vector<1x32xf32> to vector<16x32xf32>
    %76 = arith.addf %74, %75 : vector<16x32xf32>
    %77 = arith.truncf %76 : vector<16x32xf32> to vector<16x32xbf16>
    %c0_35 = arith.constant 0 : index
    %c0_36 = arith.constant 0 : index
    %78 = vector.load %arg8[%c0_35, %c0_36] : memref<16x32xbf16, #tpu.memory_space<vmem>>, vector<16x32xbf16>
    tpu.vector_store %arg8[%c0_35, %c0_36], %77 {strides = array<i32>} : memref<16x32xbf16, #tpu.memory_space<vmem>>, vector<16x32xbf16>,
    return
  }
  func.func @transform_0(%arg0: i32) -> (i32, i32) {
    %c0_i32 = arith.constant 0 : i32
    %c0_i32_0 = arith.constant 0 : i32
    return %arg0, %c0_i32 : i32, i32
  }
  func.func @transform_1(%arg0: i32) -> (i32, i32) {
    %c0_i32 = arith.constant 0 : i32
    %c0_i32_0 = arith.constant 0 : i32
    %c0_i32_1 = arith.constant 0 : i32
    return %c0_i32, %c0_i32_0 : i32, i32
  }
  func.func @transform_2(%arg0: i32) -> (i32, i32) {
    %c0_i32 = arith.constant 0 : i32
    %c0_i32_0 = arith.constant 0 : i32
    %c0_i32_1 = arith.constant 0 : i32
    return %c0_i32, %c0_i32_0 : i32, i32
  }
  func.func @transform_3(%arg0: i32) -> (i32, i32) {
    %c0_i32 = arith.constant 0 : i32
    %c0_i32_0 = arith.constant 0 : i32
    %c0_i32_1 = arith.constant 0 : i32
    return %c0_i32, %c0_i32_0 : i32, i32
  }
  func.func @transform_4(%arg0: i32) -> (i32, i32) {
    %c0_i32 = arith.constant 0 : i32
    %c0_i32_0 = arith.constant 0 : i32
    %c0_i32_1 = arith.constant 0 : i32
    return %c0_i32, %c0_i32_0 : i32, i32
  }
  func.func @transform_5(%arg0: i32) -> (i32, i32) {
    %c0_i32 = arith.constant 0 : i32
    %c0_i32_0 = arith.constant 0 : i32
    %c0_i32_1 = arith.constant 0 : i32
    return %c0_i32, %c0_i32_0 : i32, i32
  }
  func.func @transform_6(%arg0: i32) -> (i32, i32) {
    %c0_i32 = arith.constant 0 : i32
    %c0_i32_0 = arith.constant 0 : i32
    %c0_i32_1 = arith.constant 0 : i32
    return %c0_i32, %c0_i32_0 : i32, i32
  }
  func.func @transform_7(%arg0: i32) -> (i32, i32) {
    %c0_i32 = arith.constant 0 : i32
    %c0_i32_0 = arith.constant 0 : i32
    return %arg0, %c0_i32 : i32, i32
  }
}

module attributes {stable_mosaic.version = 11 : i64} {
  func.func @_matmul_bias_kernel(%arg0: i32, %arg1: i32, %arg2: memref<16x32xbf16, #tpu.memory_space<vmem>>, %arg3: memref<32x128xbf16, #tpu.memory_space<vmem>>, %arg4: memref<1x128xf32, #tpu.memory_space<vmem>>, %arg5: memref<16x128xf32, #tpu.memory_space<vmem>>) attributes {dimension_semantics = [#tpu.dimension_semantics<parallel>, #tpu.dimension_semantics<parallel>], iteration_bounds = array<i64: 1, 1>, scalar_prefetch = 0 : i64, scratch_operands = 0 : i64, tpu.core_type = #tpu.core_type<tc>, window_params = [{transform_indices = @transform_0, window_bounds = array<i64: 16, 32>}, {transform_indices = @transform_1, window_bounds = array<i64: 32, 128>}, {transform_indices = @transform_2, window_bounds = array<i64: 1, 128>}, {transform_indices = @transform_3, window_bounds = array<i64: 16, 128>}]} {
    %c0 = arith.constant 0 : index
    %c0_0 = arith.constant 0 : index
    %0 = vector.load %arg2[%c0, %c0_0] : memref<16x32xbf16, #tpu.memory_space<vmem>>, vector<16x32xbf16>
    %c0_1 = arith.constant 0 : index
    %c0_2 = arith.constant 0 : index
    %1 = vector.load %arg3[%c0_1, %c0_2] : memref<32x128xbf16, #tpu.memory_space<vmem>>, vector<32x128xbf16>
    %cst = arith.constant dense<0.000000e+00> : vector<16x128xf32>
    %2 = tpu.matmul %0, %1, %cst {dimension_numbers = #tpu.dot_dimension_numbers<[1], [0], [0], [1], [0, 0, 1, 1], [], []>} : vector<16x32xbf16>, vector<32x128xbf16>, vector<16x128xf32> -> vector<16x128xf32>
    %c0_3 = arith.constant 0 : index
    %c0_4 = arith.constant 0 : index
    %3 = vector.load %arg4[%c0_3, %c0_4] : memref<1x128xf32, #tpu.memory_space<vmem>>, vector<1x128xf32>
    %4 = vector.broadcast %3 : vector<1x128xf32> to vector<16x128xf32>
    %5 = arith.addf %2, %4 : vector<16x128xf32>
    %c0_5 = arith.constant 0 : index
    %c0_6 = arith.constant 0 : index
    %6 = vector.load %arg5[%c0_5, %c0_6] : memref<16x128xf32, #tpu.memory_space<vmem>>, vector<16x128xf32>
    tpu.vector_store %arg5[%c0_5, %c0_6], %5 {strides = array<i32>} : memref<16x128xf32, #tpu.memory_space<vmem>>, vector<16x128xf32>,
    return
  }
  func.func @transform_0(%arg0: i32, %arg1: i32) -> (i32, i32) {
    %c0_i32 = arith.constant 0 : i32
    %c0_i32_0 = arith.constant 0 : i32
    return %arg0, %c0_i32 : i32, i32
  }
  func.func @transform_1(%arg0: i32, %arg1: i32) -> (i32, i32) {
    %c0_i32 = arith.constant 0 : i32
    %c0_i32_0 = arith.constant 0 : i32
    return %c0_i32, %arg1 : i32, i32
  }
  func.func @transform_2(%arg0: i32, %arg1: i32) -> (i32, i32) {
    %c0_i32 = arith.constant 0 : i32
    %c0_i32_0 = arith.constant 0 : i32
    return %c0_i32, %arg1 : i32, i32
  }
  func.func @transform_3(%arg0: i32, %arg1: i32) -> (i32, i32) {
    %c0_i32 = arith.constant 0 : i32
    return %arg0, %arg1 : i32, i32
  }
}

</mosaic_0001>

<bundles_post_ra>
// kernel: transformer_model.9
= control target key start
LH: loop header
LB: loop body
LE: loop exit
PB: predicated region body
PF: predicated region fallthrough
CT: control target
= control target key end

     0   :  { %v157_v1 = vmov 0.0   ;;  %vm158_vm0 = vmmov 0   ;;  %s206_s0 = inlined_call_operand.vmem [shape: bf16[16,32], index: 0, kind: input, shape index: {}]   ;;  %s207_s1 = inlined_call_operand.vmem [shape: bf16[32,128], index: 1, kind: input, shape index: {}]   ;;  %s208_s2 = inlined_call_operand.vmem [shape: f32[1,128], index: 2, kind: input, shape index: {}]   ;;  %s209_s3 = inlined_call_operand.hbm [shape: f32[16,128], index: 3, kind: output, shape index: {}]  }
   0x1   :  { %v130_v0 = vld [vmem:[%s207_s1] sm:$0xff]   ;;  %117 = vmatprep.subr.bf16.mxu0 %v157_v1  ;;  %v131_v2 = vld [vmem:[%s207_s1 + $0x8] sm:$0xff]   ;;  %121 = vmatprep.mubr.msk.bf16.mxu0 %vm158_vm0, %v157_v1 }
   0x2   :  { %118 = vmatpush3.bf16.msra.mxu0 %v130_v0 }
   0x3   :  { %119 = vmatprep.subr.bf16.mxu0 %v157_v1 }
   0x4   :  { %8 = vsyncpa [#allocation3], 0  ;;  %v132_v3 = vld [vmem:[%s206_s0] sm:$0xff]   ;;  %vm46_vm1 = vcmask 261120   ;;  %s159_s20 = smov [#allocation2]  }
   0x5   :  { %v109_v4 = vld [vmem:[%s208_s2] ss:$0 sm:$0xff]  ;;  %s98_s21 = sshll.u32 %s159_s20, 4  ;;  %s99_s21 = int_to_ptr.vmem [resolvable:$true] %s98_s21 }
   0x6   :  { %120 = vmatpush3.bf16.msra.mxu0 %v131_v2  ;;  %s133_s1 = scalar_lea.vmem %s99_s21, 256  ;;  %p138_p1 = scmp.lt.s32.totalorder %s99_s21, %s99_s21 }
   0x7   :  { %p134_p0 = scmp.ne.s32.totalorder %s99_s21, %s133_s1  ;;  %p139_p2 = scmp.lt.s32.totalorder %s133_s1, %s133_s1 }
   0x9   :  { %122 = vmatmul.mubr.msk.bf16.vlgmr.msra.gmra.mrb[0].mxu0 %vm46_vm1, %v132_v3  ;;  %p140_p3 = por %p139_p2, %p138_p1 }
   0xb   :  { %p141_p4 = pnand %p140_p3, %p134_p0 }
  0xdc   :  { %v84_v5 = vpop.f32.mrb[0].mxu0 }
  0xdd   :  { %v85_v6 = vadd.f32 %v109_v4, %v84_v5  ;;  %v123_v7 = vpop.f32.mrb[1].mxu0 }
  0xde   :  { %v87_v8 = vpop.f32.mrb[2].mxu0 }
  0xdf   :  { %91 = vst [vmem:[#allocation2] sm:$0xff] %v85_v6  ;;  %v88_v9 = vadd.f32 %v109_v4, %v87_v8  ;;  %v124_v10 = vpop.f32.mrb[3].mxu0 }
  0xe1   :  { %92 = vst [vmem:[#allocation2 + $0x8] sm:$0xff] %v88_v9 }
  0xe2   :  { %144 = shalt.err (!%p141_p4)
}
  0xe3   :  { %s145_s22 = scalar_lea.hbm %s209_s3, 256 }
  0xe4   :  { %p146_p5 = scmp.ne.s32.totalorder %s209_s3, %s145_s22  ;;  %p149_p6 = scmp.lt.u32.totalorder %s145_s22, %s209_s3 }
  0xe6   :  { %p151_p7 = pnand %p149_p6, %p146_p5 }
  0xe8   :  { %154 = shalt.err (!%p151_p7)
}
  0xe9   :  { %s160_s27 = smov 128   ;;  %s161_s28 = smov 8  }
  0xea   :  { %104 = dma.vmem_to_hbm [thread:$0]  %s99_s21, 256, %s209_s3, [#allocation3], %s160_s27, %s160_s27, %s161_s28  }
  0xeb   :  { %155 = dma.done.wait [#allocation3], 256  }
  0xec   :  { %156 = vsyncadd [#allocation3], 4294967040 }
  0xed   :  { %108 = vsyncpa [#allocation3], 1 }

// kernel: transformer_model.6
= control target key start
LH: loop header
LB: loop body
LE: loop exit
PB: predicated region body
PF: predicated region fallthrough
CT: control target
= control target key end

     0   :  { %v377_v0 = vmov 0.0   ;;  %vm378_vm0 = vmmov 0   ;;  %vm57_vm1 = vcmask 261120   ;;  %v379_v53 = vmov -1.0   ;;  %s469_s1 = inlined_call_operand.vmem [shape: bf16[32,64], index: 1, kind: input, shape index: {}]   ;;  %s470_s0 = inlined_call_operand.vmem [shape: bf16[16,32], index: 0, kind: input, shape index: {}]   ;;  %s471_s3 = inlined_call_operand.vmem [shape: bf16[64,32], index: 3, kind: input, shape index: {}]   ;;  %s472_s2 = inlined_call_operand.vmem [shape: f32[1,64], index: 2, kind: input, shape index: {}]   ;;  %s473_s4 = inlined_call_operand.vmem [shape: f32[1,32], index: 4, kind: input, shape index: {}]   ;;  %s474_s5 = inlined_call_operand.vmem [shape: f32[1,32], index: 5, kind: input, shape index: {}]   ;;  %s475_s6 = inlined_call_operand.vmem [shape: f32[1,32], index: 6, kind: input, shape index: {}]   ;;  %s476_s7 = inlined_call_operand.vmem [shape: bf16[16,32], index: 7, kind: output, shape index: {}]  }
   0x1   :  { %334 = vmatprep.subr.bf16.mxu0 %v377_v0  ;;  %v357_v1 = vld [vmem:[%s469_s1] sm:$0xff]   ;;  %338 = vmatprep.mubr.msk.bf16.mxu0 %vm378_vm0, %v377_v0  ;;  %v358_v2 = vld [vmem:[%s469_s1 + $0x8] sm:$0xff]   ;;  %v362_v6 = vld [vmem:[%s471_s3 + $0x10] sm:$0xff]   ;;  %vm196_vm4 = vcmask 523264   ;;  %vm298_vm5 = vcmask 257024  }
   0x2   :  { %342 = vmatprep.subr.bf16.mxu1 %v377_v0  ;;  %350 = vmatprep.mubr.msk.bf16.mxu1 %vm378_vm0, %v377_v0  ;;  %v429_v3 = vld [vmem:[%s470_s0] sm:$0xff]   ;;  %v361_v5 = vld [vmem:[%s471_s3 + $0x8] sm:$0xff]   ;;  %v363_v7 = vld [vmem:[%s471_s3 + $0x18] sm:$0xff]  }
   0x3   :  { %335 = vmatpush3.bf16.msra.mxu0 %v357_v1  ;;  %v360_v4 = vld [vmem:[%s471_s3] sm:$0xff]  }
   0x4   :  { %336 = vmatprep.subr.bf16.mxu0 %v377_v0  ;;  %343 = vmatpush3.bf16.msra.mxu1 %v360_v4  ;;  %v305_v8 = vld [vmem:[%s472_s2] ss:$0 sm:$0xff] }
   0x5   :  { %344 = vmatprep.subr.bf16.mxu1 %v377_v0  ;;  %v314_v4 = vld [vmem:[%s473_s4] ss:$0 sm:$0xff] }
   0x7   :  { %337 = vmatpush3.bf16.msra.mxu0 %v358_v2 }
   0x8   :  { %345 = vmatpush3.bf16.msra.mxu1 %v361_v5  ;;  %v241_v5 = vunpack.c.l.bf16 %v429_v3 }
   0x9   :  { %346 = vmatprep.subr.bf16.mxu1 %v377_v0 }
   0xa   :  { %339 = vmatmul.mubr.msk.bf16.vlgmr.msra.gmra.mrb[0].mxu0 %vm57_vm1, %v429_v3 }
   0xc   :  { %347 = vmatpush3.bf16.msra.mxu1 %v362_v6 }
   0xd   :  { %348 = vmatprep.subr.bf16.mxu1 %v377_v0 }
  0x10   :  { %349 = vmatpush3.bf16.msra.mxu1 %v363_v7 }
  0xdd   :  { %v95_v9 = vpop.f32.mrb[0].mxu0 }
  0xde   :  { %v96_v10 = vadd.f32 %v305_v8, %v95_v9  ;;  %v340_v11 = vpop.f32.mrb[1].mxu0  ;;  %v242_v9 = vunpack.c.h.bf16 %v429_v3 }
  0xdf   :  { %v98_v12 = vpop.f32.mrb[2].mxu0 }
  0xe0   :  { %v102_v13 = vmul.f32 0.70710677, %v96_v10  ;;  %v99_v14 = vadd.f32 %v305_v8, %v98_v12  ;;  %v341_v15 = vpop.f32.mrb[3].mxu0  ;;  %v150_v61 = vmul.f32 0.5, %v96_v10 }
  0xe2   :  { %v108_v16 = vand.u32 2147483647, %v102_v13  ;;  %v103_v17 = vmul.f32 0.70710677, %v99_v14  ;;  %vm104_vm2 = vcmp.ge.f32.partialorder %v102_v13, 0.0  ;;  %v151_v62 = vmul.f32 0.5, %v99_v14 }
  0xe3   :  { %v106_v54 = vsel %vm104_vm2, 1.0, %v379_v53 }
  0xe4   :  { %v110_v18 = vmul.f32 0.3275911, %v108_v16  ;;  %v109_v19 = vand.u32 2147483647, %v103_v17  ;;  %v136_v23 = vsub.f32 0.0, %v108_v16  ;;  %vm105_vm3 = vcmp.ge.f32.partialorder %v103_v17, 0.0 }
  0xe5   :  { %v107_v58 = vsel %vm105_vm3, 1.0, %v379_v53 }
  0xe6   :  { %v112_v20 = vadd.f32 1.0, %v110_v18  ;;  %v111_v21 = vmul.f32 0.3275911, %v109_v19  ;;  %v137_v24 = vsub.f32 0.0, %v109_v19  ;;  %v138_v26 = vmul.f32 %v136_v23, %v108_v16 }
  0xe8   :  { %365 = vrcp.f32 %v112_v20  ;;  %v113_v22 = vadd.f32 1.0, %v111_v21  ;;  %v139_v30 = vmul.f32 %v137_v24, %v109_v19  ;;  %v140_v31 = vmul.f32 1.442695, %v138_v26 }
  0xea   :  { %367 = vrcp.f32 %v113_v22  ;;  %v142_v36 = vmul.f32 1.442695, %v139_v30 }
  0xeb   :  { %369 = vpow2.f32 %v140_v31 }
  0xec   :  { %371 = vpow2.f32 %v142_v36 }
  0xf2   :  { %v366_v25 = vpop.eup %365 }
  0xf3   :  { %v118_v27 = vmul.f32 1.0614054, %v366_v25 }
  0xf4   :  { %v368_v28 = vpop.eup %367 }
  0xf5   :  { %v310_v29 = vadd.f32 -1.4531521, %v118_v27  ;;  %v119_v32 = vmul.f32 1.0614054, %v368_v28  ;;  %v370_v47 = vpop.eup %369 }
  0xf6   :  { %v372_v51 = vpop.eup %371 }
  0xf7   :  { %v122_v33 = vmul.f32 %v366_v25, %v310_v29  ;;  %v311_v34 = vadd.f32 -1.4531521, %v119_v32 }
  0xf9   :  { %v124_v35 = vadd.f32 1.4214138, %v122_v33  ;;  %v123_v37 = vmul.f32 %v368_v28, %v311_v34  ;;  %v320_v33 = vld [vmem:[%s474_s5] ss:$0 sm:$0xff] }
  0xfb   :  { %v126_v38 = vmul.f32 %v366_v25, %v124_v35  ;;  %v125_v39 = vadd.f32 1.4214138, %v123_v37  ;;  %v321_v35 = vld [vmem:[%s475_s6] ss:$0 sm:$0xff] }
  0xfd   :  { %v312_v40 = vadd.f32 -0.28449672, %v126_v38  ;;  %v127_v41 = vmul.f32 %v368_v28, %v125_v39 }
  0xff   :  { %v130_v42 = vmul.f32 %v366_v25, %v312_v40  ;;  %v313_v43 = vadd.f32 -0.28449672, %v127_v41 }
 0x101   :  { %v132_v44 = vadd.f32 0.2548296, %v130_v42  ;;  %v131_v45 = vmul.f32 %v368_v28, %v313_v43 }
 0x103   :  { %v134_v46 = vmul.f32 %v366_v25, %v132_v44  ;;  %v133_v48 = vadd.f32 0.2548296, %v131_v45 }
 0x105   :  { %v144_v49 = vmul.f32 %v370_v47, %v134_v46  ;;  %v135_v50 = vmul.f32 %v368_v28, %v133_v48 }
 0x107   :  { %v146_v52 = vsub.f32 1.0, %v144_v49  ;;  %v145_v55 = vmul.f32 %v372_v51, %v135_v50 }
 0x109   :  { %v148_v56 = vmul.f32 %v146_v52, %v106_v54  ;;  %v147_v57 = vsub.f32 1.0, %v145_v55 }
 0x10b   :  { %v152_v59 = vadd.f32 1.0, %v148_v56  ;;  %v149_v60 = vmul.f32 %v147_v57, %v107_v58 }
 0x10d   :  { %v153_v63 = vadd.f32 1.0, %v149_v60  ;;  %v154_v0 = vmul.f32 %v152_v59, %v150_v61 }
 0x10f   :  { %v155_v1 = vmul.f32 %v153_v63, %v151_v62 }
 0x111   :  { %v156_v2 = vpack.c.bf16 %v155_v1, %v154_v0 }
 0x113   :  { %351 = vmatmul.mubr.msk.bf16.vlgmr.msra.gmra.mrb[0].mxu1 %vm196_vm4, %v156_v2 }
 0x1e6   :  { %v234_v6 = vpop.f32.mrb[0].mxu1 }
 0x1e7   :  { %v235_v7 = vadd.f32 %v314_v4, %v234_v6  ;;  %v352_v8 = vpop.f32.mrb[1].mxu1 }
 0x1e8   :  { %v237_v11 = vpop.f32.mrb[2].mxu1 }
 0x1e9   :  { %v238_v10 = vadd.f32 %v314_v4, %v237_v11  ;;  %v353_v12 = vpop.f32.mrb[3].mxu1  ;;  %v243_v13 = vadd.f32 %v241_v5, %v235_v7 }
 0x1eb   :  { %v247_v14 = vsel %vm57_vm1, %v243_v13, 0.0  ;;  %v244_v15 = vadd.f32 %v242_v9, %v238_v10 }
 0x1ec   :  { %248 = vadd.xlane.f32.xlu0 %v247_v14 }
 0x1ed   :  { %v250_v16 = vsel %vm57_vm1, %v244_v15, 0.0 }
 0x1f0   :  { %251 = vadd.xlane.f32.xlu0 %v250_v16 }
 0x279   :  { %v249_v17 = vpop.xlane.xlu0 %248 }
 0x27a   :  { %v254_v18 = vmul.f32 0.03125, %v249_v17 }
 0x27c   :  { %v256_v19 = vsub.f32 %v243_v13, %v254_v18 }
 0x27d   :  { %v252_v20 = vpop.xlane.xlu0 %251 }
 0x27e   :  { %v255_v21 = vmul.f32 0.03125, %v252_v20  ;;  %v258_v22 = vmul.f32 %v256_v19, %v256_v19 }
 0x280   :  { %v257_v23 = vsub.f32 %v244_v15, %v255_v21  ;;  %v260_v3 = vsel %vm57_vm1, %v258_v22, 0.0 }
 0x281   :  { %261 = vadd.xlane.f32.xlu1 %v260_v3 }
 0x282   :  { %v259_v24 = vmul.f32 %v257_v23, %v257_v23 }
 0x284   :  { %v263_v25 = vsel %vm57_vm1, %v259_v24, 0.0 }
 0x285   :  { %264 = vadd.xlane.f32.xlu1 %v263_v25 }
 0x30e   :  { %v262_v26 = vpop.xlane.xlu1 %261 }
 0x30f   :  { %v266_v27 = vmul.f32 0.03125, %v262_v26 }
 0x311   :  { %v268_v28 = vadd.f32 1e-05, %v266_v27 }
 0x312   :  { %v265_v29 = vpop.xlane.xlu1 %264 }
 0x313   :  { %373 = vrsqrt.f32 %v268_v28  ;;  %v267_v30 = vmul.f32 0.03125, %v265_v29 }
 0x315   :  { %v269_v31 = vadd.f32 1e-05, %v267_v30 }
 0x317   :  { %375 = vrsqrt.f32 %v269_v31 }
 0x31d   :  { %v374_v32 = vpop.eup %373 }
 0x31e   :  { %v272_v34 = vmul.f32 %v374_v32, %v256_v19 }
 0x320   :  { %v280_v36 = vmul.f32 %v320_v33, %v272_v34 }
 0x321   :  { %v376_v37 = vpop.eup %375 }
 0x322   :  { %v288_v38 = vadd.f32 %v321_v35, %v280_v36  ;;  %v273_v39 = vmul.f32 %v376_v37, %v257_v23 }
 0x324   :  { %v324_v40 = vpack.c.bf16 %v288_v38, %v288_v38  ;;  %v281_v41 = vmul.f32 %v320_v33, %v273_v39 }
 0x326   :  { %299 = vst.msk [vmem:[%s476_s7] sm:$0xf] %vm298_vm5, %v324_v40  ;;  %v289_v42 = vadd.f32 %v321_v35, %v281_v41 }
 0x328   :  { %v325_v43 = vpack.c.bf16 %v289_v42, %v289_v42 }
 0x32a   :  { %300 = vst.msk [vmem:[%s476_s7 + $0x4] sm:$0xf] %vm298_vm5, %v325_v43 }

// kernel: transformer_model.5
= control target key start
LH: loop header
LB: loop body
LE: loop exit
PB: predicated region body
PF: predicated region fallthrough
CT: control target
= control target key end

     0   :  { %v1405_v0 = vmov 0.0   ;;  %vm1406_vm0 = vmmov 0   ;;  %vm57_vm1 = vcmask 261120   ;;  %vm112_vm2 = vcmask 64512   ;;  %s1410_s9 = smov 120   ;;  %s1411_s10 = smov 56   ;;  %s1674_s1 = inlined_call_operand.vmem [shape: bf16[32,96], index: 1, kind: input, shape index: {}]   ;;  %s1675_s0 = inlined_call_operand.vmem [shape: bf16[2,8,32], index: 0, kind: input, shape index: {}]   ;;  %s1676_s2 = inlined_call_operand.vmem [shape: f32[1,96], index: 2, kind: input, shape index: {}]   ;;  %s1677_s3 = inlined_call_operand.vmem [shape: bf16[32,32], index: 3, kind: input, shape index: {}]   ;;  %s1678_s4 = inlined_call_operand.vmem [shape: f32[1,32], index: 4, kind: input, shape index: {}]   ;;  %s1679_s5 = inlined_call_operand.vmem [shape: f32[1,32], index: 5, kind: input, shape index: {}]   ;;  %s1680_s6 = inlined_call_operand.vmem [shape: f32[1,32], index: 6, kind: input, shape index: {}]   ;;  %s1681_s7 = inlined_call_operand.vmem [shape: bf16[2,8,32], index: 7, kind: output, shape index: {}]  }
   0x1   :  { %1220 = vmatprep.subr.bf16.mxu0 %v1405_v0  ;;  %v1363_v1 = vld [vmem:[%s1674_s1] sm:$0xff]   ;;  %1224 = vmatprep.mubr.msk.bf16.mxu0 %vm1406_vm0, %v1405_v0  ;;  %v1364_v2 = vld [vmem:[%s1674_s1 + $0x8] sm:$0xff]   ;;  %v102_v17 = vlaneseq  ;;  %s1408_s1 = smov 64   ;;  %vm239_vm4 = vcmask 1043456   ;;  %s1412_s11 = smov 80   ;;  %vm1023_vm5 = vcmask 130048  }
   0x2   :  { %1228 = vmatprep.subr.bf16.mxu1 %v1405_v0  ;;  %1230 = vmatprep.mubr.msk.bf16.mxu1 %vm1406_vm0, %v1405_v0  ;;  %v1476_v3 = vld [vmem:[%s1675_s0] sm:$0xff]   ;;  %s1407_s0 = smov 96   ;;  %s1413_s12 = smov 112   ;;  %vm1026_vm6 = vcmask 195584   ;;  %vm1148_vm7 = vcmask 257024  }
   0x3   :  { %1221 = vmatpush3.bf16.msra.mxu0 %v1363_v1  ;;  %v1155_v4 = vld [vmem:[%s1676_s2] ss:$0 sm:$0xff]  ;;  %v103_v18 = vshrl.u32 %v102_v17, 7  ;;  %v105_v19 = vand.u32 127, %v102_v17  ;;  %s1409_s2 = smov 88   ;;  %s1414_s13 = smov 48  }
   0x4   :  { %1222 = vmatprep.subr.bf16.mxu0 %v1405_v0  ;;  %s1415_s14 = smov 72   ;;  %s1416_s15 = smov 104  }
   0x5   :  { %vm1505_vm3 = vcmp.le.s32.totalorder %v105_v19, %v103_v18  ;;  %s1417_s16 = smov 40   ;;  %s1418_s17 = smov 8  }
   0x6   :  { %s1419_s18 = smov 16   ;;  %s1420_s23 = smov 24  }
   0x7   :  { %1223 = vmatpush3.bf16.msra.mxu0 %v1364_v2 }
   0x8   :  { %1234 = vmatprep.subr.bf16.mxu0 %v1405_v0 }
   0xa   :  { %1225 = vmatmul.mubr.msk.bf16.vlgmr.msra.gmra.mrb[0].mxu0 %vm57_vm1, %v1476_v3 }
   0xb   :  { %1236 = vmatprep.mubr.msk.bf16.mxu0 %vm1406_vm0, %v1405_v0 }
  0xdd   :  { %v95_v5 = vpop.f32.mrb[0].mxu0 }
  0xde   :  { %v96_v6 = vadd.f32 %v1155_v4, %v95_v5  ;;  %v1226_v7 = vpop.f32.mrb[1].mxu0 }
  0xdf   :  { %v98_v8 = vpop.f32.mrb[2].mxu0 }
  0xe0   :  { %v1487_v9 = vpack.c.bf16 %v96_v6, %v96_v6  ;;  %v99_v10 = vadd.f32 %v1155_v4, %v98_v8  ;;  %v1227_v11 = vpop.f32.mrb[3].mxu0 }
  0xe2   :  { %110 = vrot.lane.b32.xlu0 %v1487_v9, %s1407_s0  ;;  %v1490_v12 = vpack.c.bf16 %v99_v10, %v99_v10 }
  0xe6   :  { %160 = vrot.lane.b32.xlu0 %v1490_v12, %s1407_s0 }
 0x154   :  { %v111_v13 = vpop.permute.xlu0 %110 }
 0x155   :  { %v117_v14 = vsel %vm112_vm2, %v111_v13, 0 }
 0x156   :  { %1229 = vmatpush3.bf16.xpose.msra.mxu1 %v117_v14 }
 0x157   :  { %1240 = vmatprep.subr.bf16.mxu1 %v1405_v0 }
 0x158   :  { %v161_v15 = vpop.permute.xlu0 %160 }
 0x159   :  { %v166_v16 = vsel %vm112_vm2, %v161_v15, 0 }
 0x15a   :  { %1235 = vmatpush3.bf16.xpose.msra.mxu0 %v166_v16 }
 0x15b   :  { %1246 = vmatprep.subr.bf16.mxu0 %v1405_v0 }
 0x15d   :  { %1231 = vmatmul.mubr.msk.bf16.vlgmr.msra.gmra.mrb[0].mxu1 %vm112_vm2, %v1487_v9 }
 0x15e   :  { %1242 = vmatprep.mubr.msk.bf16.mxu1 %vm1406_vm0, %v1405_v0 }
 0x161   :  { %1237 = vmatmul.mubr.msk.bf16.vlgmr.msra.gmra.mrb[4].mxu0 %vm112_vm2, %v1490_v12 }
 0x162   :  { %1248 = vmatprep.mubr.msk.bf16.mxu0 %vm1406_vm0, %v1405_v0 }
 0x230   :  { %v153_v21 = vpop.f32.mrb[0].mxu1 }
 0x231   :  { %v208_v22 = vsel %vm1505_vm3, %v153_v21, -1e+30  ;;  %v1232_v23 = vpop.f32.mrb[1].mxu1 }
 0x232   :  { %v156_v24 = vpop.f32.mrb[2].mxu1  ;;  %v210_v25 = vsel %vm112_vm2, %v208_v22, -inf }
 0x233   :  { %211 = vmax.xlane.f32.xlu1 %v210_v25  ;;  %v1233_v26 = vpop.f32.mrb[3].mxu1 }
 0x234   :  { %v202_v27 = vpop.f32.mrb[4].mxu0 }
 0x235   :  { %v209_v28 = vsel %vm1505_vm3, %v202_v27, -1e+30  ;;  %v1238_v29 = vpop.f32.mrb[5].mxu0 }
 0x236   :  { %v205_v30 = vpop.f32.mrb[6].mxu0  ;;  %v213_v31 = vsel %vm112_vm2, %v209_v28, -inf }
 0x237   :  { %214 = vmax.xlane.f32.xlu1 %v213_v31  ;;  %v1239_v32 = vpop.f32.mrb[7].mxu0 }
 0x248   :  { %234 = vrot.lane.b32.xlu1 %v1487_v9, %s1408_s1 }
 0x24c   :  { %283 = vrot.lane.b32.xlu1 %v1490_v12, %s1408_s1 }
 0x250   :  { %333 = vrot.lane.b32.xlu1 %v1487_v9, %s1409_s2 }
 0x2c0   :  { %v212_v33 = vpop.xlane.xlu1 %211 }
 0x2c1   :  { %v216_v34 = vsub.f32 %v208_v22, %v212_v33 }
 0x2c3   :  { %v218_v35 = vmul.f32 1.442695, %v216_v34 }
 0x2c4   :  { %v215_v36 = vpop.xlane.xlu1 %214 }
 0x2c5   :  { %1369 = vpow2.f32 %v218_v35  ;;  %v217_v37 = vsub.f32 %v209_v28, %v215_v36 }
 0x2c7   :  { %v220_v38 = vmul.f32 1.442695, %v217_v37 }
 0x2c8   :  { %v235_v39 = vpop.permute.xlu1 %234 }
 0x2c9   :  { %1371 = vpow2.f32 %v220_v38  ;;  %v241_v40 = vsel %vm239_vm4, %v235_v39, 0 }
 0x2ca   :  { %1241 = vmatpush3.bf16.msra.mxu1 %v241_v40 }
 0x2cb   :  { %1252 = vmatprep.subr.bf16.mxu1 %v1405_v0 }
 0x2cc   :  { %v284_v41 = vpop.permute.xlu1 %283 }
 0x2cd   :  { %v289_v42 = vsel %vm239_vm4, %v284_v41, 0 }
 0x2ce   :  { %1247 = vmatpush3.bf16.msra.mxu0 %v289_v42 }
 0x2cf   :  { %v1370_v43 = vpop.eup %1369  ;;  %1258 = vmatprep.subr.bf16.mxu0 %v1405_v0 }
 0x2d0   :  { %v222_v44 = vsel %vm112_vm2, %v1370_v43, 0.0  ;;  %v334_v47 = vpop.permute.xlu1 %333 }
 0x2d1   :  { %223 = vadd.xlane.f32.xlu0 %v222_v44  ;;  %v339_v54 = vsel %vm112_vm2, %v334_v47, 0 }
 0x2d3   :  { %v1372_v45 = vpop.eup %1371 }
 0x2d4   :  { %v225_v46 = vsel %vm112_vm2, %v1372_v45, 0.0 }
 0x2d5   :  { %226 = vadd.xlane.f32.xlu1 %v225_v46 }
 0x2e6   :  { %383 = vrot.lane.b32.xlu1 %v1490_v12, %s1409_s2 }
 0x2e7   :  { %331 = vrot.lane.b32.xlu0 %v1487_v9, %s1410_s9 }
 0x2ea   :  { %381 = vrot.lane.b32.xlu1 %v1490_v12, %s1410_s9 }
 0x35e   :  { %v224_v48 = vpop.xlane.xlu0 %223 }
 0x35f   :  { %1373 = vrcp.f32 %v224_v48 }
 0x362   :  { %v227_v49 = vpop.xlane.xlu1 %226  ;;  %v332_v59 = vpop.permute.xlu0 %331 }
 0x363   :  { %1375 = vrcp.f32 %v227_v49 }
 0x366   :  { %v384_v56 = vpop.permute.xlu1 %383 }
 0x367   :  { %v389_v58 = vsel %vm112_vm2, %v384_v56, 0 }
 0x369   :  { %v1374_v50 = vpop.eup %1373 }
 0x36a   :  { %v230_v51 = vmul.f32 %v1374_v50, %v1370_v43  ;;  %v382_v60 = vpop.permute.xlu1 %381 }
 0x36c   :  { %v232_v52 = vpack.c.bf16 %v230_v51, %v230_v51 }
 0x36d   :  { %v1376_v53 = vpop.eup %1375 }
 0x36e   :  { %v231_v55 = vmul.f32 %v1376_v53, %v1372_v45  ;;  %1243 = vmatmul.mubr.msk.bf16.vlgmr.msra.gmra.mrb[4].mxu1 %vm112_vm2, %v232_v52 }
 0x36f   :  { %1253 = vmatpush3.bf16.xpose.msra.mxu1 %v339_v54  ;;  %1254 = vmatprep.mubr.msk.bf16.mxu1 %vm1406_vm0, %v1405_v0 }
 0x370   :  { %v233_v57 = vpack.c.bf16 %v231_v55, %v231_v55  ;;  %1264 = vmatprep.subr.bf16.mxu1 %v1405_v0 }
 0x372   :  { %1249 = vmatmul.mubr.msk.bf16.vlgmr.msra.gmra.mrb[8].mxu0 %vm112_vm2, %v233_v57 }
 0x373   :  { %1259 = vmatpush3.bf16.xpose.msra.mxu0 %v389_v58  ;;  %1260 = vmatprep.mubr.msk.bf16.mxu0 %vm1406_vm0, %v1405_v0 }
 0x374   :  { %1270 = vmatprep.subr.bf16.mxu0 %v1405_v0 }
 0x376   :  { %1255 = vmatmul.mubr.msk.bf16.vlgmr.msra.gmra.mrb[8].mxu1 %vm112_vm2, %v332_v59 }
 0x377   :  { %1266 = vmatprep.mubr.msk.bf16.mxu1 %vm1406_vm0, %v1405_v0 }
 0x37a   :  { %1261 = vmatmul.mubr.msk.bf16.vlgmr.msra.gmra.mrb[12].mxu0 %vm112_vm2, %v382_v60 }
 0x37b   :  { %1272 = vmatprep.mubr.msk.bf16.mxu0 %vm1406_vm0, %v1405_v0 }
 0x441   :  { %v1543_v61 = vpop.f32.mrb[4].mxu1 }
 0x442   :  { %v1244_v62 = vpop.f32.mrb[5].mxu1 }
 0x443   :  { %v280_v63 = vpop.f32.mrb[6].mxu1 }
 0x444   :  { %v1245_v1 = vpop.f32.mrb[7].mxu1 }
 0x445   :  { %v1545_v2 = vpop.f32.mrb[8].mxu0 }
 0x446   :  { %v1250_v4 = vpop.f32.mrb[9].mxu0 }
 0x447   :  { %v328_v5 = vpop.f32.mrb[10].mxu0 }
 0x448   :  { %v1251_v6 = vpop.f32.mrb[11].mxu0 }
 0x449   :  { %v375_v7 = vpop.f32.mrb[8].mxu1 }
 0x44a   :  { %v431_v8 = vsel %vm1505_vm3, %v375_v7, -1e+30  ;;  %v1256_v10 = vpop.f32.mrb[9].mxu1 }
 0x44b   :  { %v378_v11 = vpop.f32.mrb[10].mxu1  ;;  %v433_v13 = vsel %vm112_vm2, %v431_v8, -inf }
 0x44c   :  { %434 = vmax.xlane.f32.xlu1 %v433_v13  ;;  %v1257_v14 = vpop.f32.mrb[11].mxu1 }
 0x44d   :  { %v425_v15 = vpop.f32.mrb[12].mxu0 }
 0x44e   :  { %v432_v16 = vsel %vm1505_vm3, %v425_v15, -1e+30  ;;  %v1262_v17 = vpop.f32.mrb[13].mxu0 }
 0x44f   :  { %v428_v18 = vpop.f32.mrb[14].mxu0  ;;  %v436_v19 = vsel %vm112_vm2, %v432_v16, -inf }
 0x450   :  { %437 = vmax.xlane.f32.xlu0 %v436_v19  ;;  %v1263_v21 = vpop.f32.mrb[15].mxu0 }
 0x45d   :  { %457 = vrot.lane.b32.xlu1 %v1487_v9, %s1411_s10 }
 0x461   :  { %555 = vrot.lane.b32.xlu1 %v1487_v9, %s1412_s11 }
 0x466   :  { %505 = vrot.lane.b32.xlu0 %v1490_v12, %s1411_s10 }
 0x46a   :  { %553 = vrot.lane.b32.xlu0 %v1487_v9, %s1413_s12 }
 0x4d9   :  { %v435_v22 = vpop.xlane.xlu1 %434 }
 0x4da   :  { %v439_v23 = vsub.f32 %v431_v8, %v435_v22 }
 0x4dc   :  { %v441_v24 = vmul.f32 1.442695, %v439_v23 }
 0x4dd   :  { %v458_v25 = vpop.permute.xlu1 %457  ;;  %v438_v26 = vpop.xlane.xlu0 %437 }
 0x4de   :  { %1377 = vpow2.f32 %v441_v24  ;;  %v463_v27 = vsel %vm239_vm4, %v458_v25, 0  ;;  %v440_v28 = vsub.f32 %v432_v16, %v438_v26 }
 0x4df   :  { %1265 = vmatpush3.bf16.msra.mxu1 %v463_v27 }
 0x4e0   :  { %v443_v29 = vmul.f32 1.442695, %v440_v28  ;;  %1276 = vmatprep.subr.bf16.mxu1 %v1405_v0 }
 0x4e1   :  { %v506_v30 = vpop.permute.xlu0 %505  ;;  %v556_v36 = vpop.permute.xlu1 %555 }
 0x4e2   :  { %1379 = vpow2.f32 %v443_v29  ;;  %v511_v31 = vsel %vm239_vm4, %v506_v30, 0  ;;  %v561_v43 = vsel %vm112_vm2, %v556_v36, 0 }
 0x4e3   :  { %1271 = vmatpush3.bf16.msra.mxu0 %v511_v31 }
 0x4e4   :  { %1282 = vmatprep.subr.bf16.mxu0 %v1405_v0 }
 0x4e5   :  { %v554_v48 = vpop.permute.xlu0 %553 }
 0x4e8   :  { %v1378_v32 = vpop.eup %1377 }
 0x4e9   :  { %v445_v33 = vsel %vm112_vm2, %v1378_v32, 0.0 }
 0x4ea   :  { %446 = vadd.xlane.f32.xlu1 %v445_v33 }
 0x4ec   :  { %v1380_v34 = vpop.eup %1379 }
 0x4ed   :  { %v448_v35 = vsel %vm112_vm2, %v1380_v34, 0.0 }
 0x4ee   :  { %449 = vadd.xlane.f32.xlu1 %v448_v35 }
 0x4ff   :  { %605 = vrot.lane.b32.xlu1 %v1490_v12, %s1412_s11 }
 0x503   :  { %603 = vrot.lane.b32.xlu1 %v1490_v12, %s1413_s12 }
 0x577   :  { %v447_v37 = vpop.xlane.xlu1 %446 }
 0x578   :  { %1381 = vrcp.f32 %v447_v37 }
 0x57b   :  { %v450_v38 = vpop.xlane.xlu1 %449 }
 0x57c   :  { %1383 = vrcp.f32 %v450_v38 }
 0x57f   :  { %v606_v45 = vpop.permute.xlu1 %605 }
 0x580   :  { %v611_v47 = vsel %vm112_vm2, %v606_v45, 0 }
 0x582   :  { %v1382_v39 = vpop.eup %1381 }
 0x583   :  { %v453_v40 = vmul.f32 %v1382_v39, %v1378_v32  ;;  %v604_v49 = vpop.permute.xlu1 %603 }
 0x585   :  { %v455_v41 = vpack.c.bf16 %v453_v40, %v453_v40 }
 0x586   :  { %v1384_v42 = vpop.eup %1383 }
 0x587   :  { %v454_v44 = vmul.f32 %v1384_v42, %v1380_v34  ;;  %1267 = vmatmul.mubr.msk.bf16.vlgmr.msra.gmra.mrb[12].mxu1 %vm112_vm2, %v455_v41 }
 0x588   :  { %1277 = vmatpush3.bf16.xpose.msra.mxu1 %v561_v43  ;;  %1278 = vmatprep.mubr.msk.bf16.mxu1 %vm1406_vm0, %v1405_v0 }
 0x589   :  { %v456_v46 = vpack.c.bf16 %v454_v44, %v454_v44  ;;  %1288 = vmatprep.subr.bf16.mxu1 %v1405_v0 }
 0x58b   :  { %1273 = vmatmul.mubr.msk.bf16.vlgmr.msra.gmra.mrb[16].mxu0 %vm112_vm2, %v456_v46 }
 0x58c   :  { %1283 = vmatpush3.bf16.xpose.msra.mxu0 %v611_v47  ;;  %1284 = vmatprep.mubr.msk.bf16.mxu0 %vm1406_vm0, %v1405_v0 }
 0x58d   :  { %1294 = vmatprep.subr.bf16.mxu0 %v1405_v0 }
 0x58f   :  { %1279 = vmatmul.mubr.msk.bf16.vlgmr.msra.gmra.mrb[16].mxu1 %vm112_vm2, %v554_v48 }
 0x590   :  { %1290 = vmatprep.mubr.msk.bf16.mxu1 %vm1406_vm0, %v1405_v0 }
 0x593   :  { %1285 = vmatmul.mubr.msk.bf16.vlgmr.msra.gmra.mrb[20].mxu0 %vm112_vm2, %v604_v49 }
 0x594   :  { %1296 = vmatprep.mubr.msk.bf16.mxu0 %vm1406_vm0, %v1405_v0 }
 0x65a   :  { %v1581_v50 = vpop.f32.mrb[12].mxu1 }
 0x65b   :  { %v1268_v51 = vpop.f32.mrb[13].mxu1 }
 0x65c   :  { %v502_v52 = vpop.f32.mrb[14].mxu1 }
 0x65d   :  { %v1269_v53 = vpop.f32.mrb[15].mxu1 }
 0x65e   :  { %v1583_v54 = vpop.f32.mrb[16].mxu0 }
 0x65f   :  { %v1348_v55 = vpack.i.bf16 %v1583_v54, %v1581_v50  ;;  %v1274_v56 = vpop.f32.mrb[17].mxu0 }
 0x660   :  { %v550_v57 = vpop.f32.mrb[18].mxu0 }
 0x661   :  { %v1275_v58 = vpop.f32.mrb[19].mxu0 }
 0x662   :  { %v597_v59 = vpop.f32.mrb[16].mxu1 }
 0x663   :  { %v653_v60 = vsel %vm1505_vm3, %v597_v59, -1e+30  ;;  %v1280_v62 = vpop.f32.mrb[17].mxu1 }
 0x664   :  { %v600_v63 = vpop.f32.mrb[18].mxu1  ;;  %v655_v1 = vsel %vm112_vm2, %v653_v60, -inf }
 0x665   :  { %656 = vmax.xlane.f32.xlu0 %v655_v1  ;;  %v1281_v4 = vpop.f32.mrb[19].mxu1 }
 0x666   :  { %v647_v5 = vpop.f32.mrb[20].mxu0 }
 0x667   :  { %v654_v6 = vsel %vm1505_vm3, %v647_v5, -1e+30  ;;  %v1286_v7 = vpop.f32.mrb[21].mxu0 }
 0x668   :  { %v650_v8 = vpop.f32.mrb[22].mxu0  ;;  %v658_v10 = vsel %vm112_vm2, %v654_v6, -inf }
 0x669   :  { %659 = vmax.xlane.f32.xlu1 %v658_v10  ;;  %v1287_v11 = vpop.f32.mrb[23].mxu0 }
 0x67a   :  { %679 = vrot.lane.b32.xlu1 %v1487_v9, %s1414_s13 }
 0x67e   :  { %777 = vrot.lane.b32.xlu1 %v1487_v9, %s1415_s14 }
 0x682   :  { %827 = vrot.lane.b32.xlu1 %v1490_v12, %s1415_s14 }
 0x686   :  { %825 = vrot.lane.b32.xlu1 %v1490_v12, %s1416_s15 }
 0x6f2   :  { %v657_v13 = vpop.xlane.xlu0 %656 }
 0x6f3   :  { %v661_v14 = vsub.f32 %v653_v60, %v657_v13 }
 0x6f5   :  { %v663_v15 = vmul.f32 1.442695, %v661_v14 }
 0x6f6   :  { %v660_v16 = vpop.xlane.xlu1 %659 }
 0x6f7   :  { %1385 = vpow2.f32 %v663_v15  ;;  %v662_v17 = vsub.f32 %v654_v6, %v660_v16 }
 0x6f9   :  { %v665_v18 = vmul.f32 1.442695, %v662_v17 }
 0x6fa   :  { %v680_v19 = vpop.permute.xlu1 %679 }
 0x6fb   :  { %1387 = vpow2.f32 %v665_v18  ;;  %v685_v21 = vsel %vm239_vm4, %v680_v19, 0 }
 0x6fc   :  { %1289 = vmatpush3.bf16.msra.mxu1 %v685_v21 }
 0x6fd   :  { %1300 = vmatprep.subr.bf16.mxu1 %v1405_v0 }
 0x6fe   :  { %v778_v31 = vpop.permute.xlu1 %777 }
 0x6ff   :  { %v783_v35 = vsel %vm112_vm2, %v778_v31, 0 }
 0x701   :  { %v1386_v22 = vpop.eup %1385 }
 0x702   :  { %v667_v23 = vsel %vm112_vm2, %v1386_v22, 0.0  ;;  %v828_v37 = vpop.permute.xlu1 %827 }
 0x703   :  { %668 = vadd.xlane.f32.xlu0 %v667_v23  ;;  %v833_v39 = vsel %vm112_vm2, %v828_v37, 0 }
 0x705   :  { %v1388_v24 = vpop.eup %1387 }
 0x706   :  { %v670_v25 = vsel %vm112_vm2, %v1388_v24, 0.0  ;;  %v826_v41 = vpop.permute.xlu1 %825 }
 0x707   :  { %671 = vadd.xlane.f32.xlu0 %v670_v25 }
 0x71d   :  { %727 = vrot.lane.b32.xlu0 %v1490_v12, %s1414_s13 }
 0x721   :  { %775 = vrot.lane.b32.xlu0 %v1487_v9, %s1416_s15 }
 0x790   :  { %v669_v26 = vpop.xlane.xlu0 %668 }
 0x791   :  { %1389 = vrcp.f32 %v669_v26  ;;  %v1367_v26 = vld [vmem:[%s1677_s3 + $0x8] sm:$0xff]  }
 0x794   :  { %v672_v27 = vpop.xlane.xlu0 %671 }
 0x795   :  { %1391 = vrcp.f32 %v672_v27 }
 0x798   :  { %v728_v28 = vpop.permute.xlu0 %727 }
 0x799   :  { %v733_v29 = vsel %vm239_vm4, %v728_v28, 0 }
 0x79a   :  { %1295 = vmatpush3.bf16.msra.mxu0 %v733_v29 }
 0x79b   :  { %v1390_v30 = vpop.eup %1389  ;;  %1306 = vmatprep.subr.bf16.mxu0 %v1405_v0 }
 0x79c   :  { %v675_v32 = vmul.f32 %v1390_v30, %v1386_v22  ;;  %v776_v40 = vpop.permute.xlu0 %775 }
 0x79e   :  { %v677_v33 = vpack.c.bf16 %v675_v32, %v675_v32 }
 0x79f   :  { %v1392_v34 = vpop.eup %1391 }
 0x7a0   :  { %v676_v36 = vmul.f32 %v1392_v34, %v1388_v24  ;;  %1291 = vmatmul.mubr.msk.bf16.vlgmr.msra.gmra.mrb[20].mxu1 %vm112_vm2, %v677_v33 }
 0x7a1   :  { %1301 = vmatpush3.bf16.xpose.msra.mxu1 %v783_v35  ;;  %1302 = vmatprep.mubr.msk.bf16.mxu1 %vm1406_vm0, %v1405_v0 }
 0x7a2   :  { %v678_v38 = vpack.c.bf16 %v676_v36, %v676_v36  ;;  %1312 = vmatprep.subr.bf16.mxu1 %v1405_v0 }
 0x7a4   :  { %1297 = vmatmul.mubr.msk.bf16.vlgmr.msra.gmra.mrb[24].mxu0 %vm112_vm2, %v678_v38 }
 0x7a5   :  { %1307 = vmatpush3.bf16.xpose.msra.mxu0 %v833_v39  ;;  %1308 = vmatprep.mubr.msk.bf16.mxu0 %vm1406_vm0, %v1405_v0 }
 0x7a6   :  { %1318 = vmatprep.subr.bf16.mxu0 %v1405_v0 }
 0x7a8   :  { %1303 = vmatmul.mubr.msk.bf16.vlgmr.msra.gmra.mrb[24].mxu1 %vm112_vm2, %v776_v40 }
 0x7a9   :  { %1314 = vmatprep.mubr.msk.bf16.mxu1 %vm1406_vm0, %v1405_v0 }
 0x7ac   :  { %1309 = vmatmul.mubr.msk.bf16.vlgmr.msra.gmra.mrb[28].mxu0 %vm112_vm2, %v826_v41 }
 0x7ad   :  { %1320 = vmatprep.mubr.msk.bf16.mxu0 %vm1406_vm0, %v1405_v0 }
 0x873   :  { %v721_v42 = vpop.f32.mrb[20].mxu1 }
 0x874   :  { %v1292_v43 = vpop.f32.mrb[21].mxu1 }
 0x875   :  { %v724_v44 = vpop.f32.mrb[22].mxu1 }
 0x876   :  { %v1293_v45 = vpop.f32.mrb[23].mxu1 }
 0x877   :  { %v769_v46 = vpop.f32.mrb[24].mxu0 }
 0x878   :  { %v1353_v47 = vpack.i.bf16 %v769_v46, %v721_v42  ;;  %v1298_v48 = vpop.f32.mrb[25].mxu0 }
 0x879   :  { %v772_v49 = vpop.f32.mrb[26].mxu0 }
 0x87a   :  { %v1299_v51 = vpop.f32.mrb[27].mxu0 }
 0x87b   :  { %v819_v52 = vpop.f32.mrb[24].mxu1 }
 0x87c   :  { %v875_v53 = vsel %vm1505_vm3, %v819_v52, -1e+30  ;;  %v1304_v56 = vpop.f32.mrb[25].mxu1  ;;  %v1176_v52 = vld [vmem:[%s1678_s4] ss:$0 sm:$0xff] }
 0x87d   :  { %v822_v57 = vpop.f32.mrb[26].mxu1  ;;  %v877_v58 = vsel %vm112_vm2, %v875_v53, -inf }
 0x87e   :  { %878 = vmax.xlane.f32.xlu0 %v877_v58  ;;  %v1305_v59 = vpop.f32.mrb[27].mxu1 }
 0x87f   :  { %v869_v60 = vpop.f32.mrb[28].mxu0 }
 0x880   :  { %v876_v62 = vsel %vm1505_vm3, %v869_v60, -1e+30  ;;  %v1310_v63 = vpop.f32.mrb[29].mxu0 }
 0x881   :  { %v872_v1 = vpop.f32.mrb[30].mxu0  ;;  %v880_v4 = vsel %vm112_vm2, %v876_v62, -inf }
 0x882   :  { %881 = vmax.xlane.f32.xlu1 %v880_v4  ;;  %v1311_v5 = vpop.f32.mrb[31].mxu0 }
 0x893   :  { %901 = vrot.lane.b32.xlu1 %v1487_v9, %s1417_s16 }
 0x897   :  { %1349 = vrot.lane.b32.xlu1 %v1348_v55, %s1418_s17 }
 0x89b   :  { %1354 = vrot.lane.b32.xlu1 %v1353_v47, %s1419_s18 }
 0x90b   :  { %v879_v6 = vpop.xlane.xlu0 %878 }
 0x90c   :  { %v883_v7 = vsub.f32 %v875_v53, %v879_v6  ;;  %v1097_v53 = vunpack.c.l.bf16 %v1476_v3 }
 0x90e   :  { %v885_v20 = vmul.f32 1.442695, %v883_v7 }
 0x90f   :  { %v882_v8 = vpop.xlane.xlu1 %881 }
 0x910   :  { %1393 = vpow2.f32 %v885_v20  ;;  %v884_v10 = vsub.f32 %v876_v62, %v882_v8 }
 0x912   :  { %v887_v11 = vmul.f32 1.442695, %v884_v10 }
 0x913   :  { %v902_v13 = vpop.permute.xlu1 %901 }
 0x914   :  { %1395 = vpow2.f32 %v887_v11  ;;  %v907_v14 = vsel %vm239_vm4, %v902_v13, 0 }
 0x915   :  { %1313 = vmatpush3.bf16.msra.mxu1 %v907_v14 }
 0x916   :  { %1324 = vmatprep.subr.bf16.mxu1 %v1405_v0 }
 0x917   :  { %v1350_v36 = vpop.permute.xlu1 %1349 }
 0x918   :  { %v1352_v38 = vunpack.i.h.bf16 %v1350_v36 }
 0x91a   :  { %v1394_v9 = vpop.eup %1393  ;;  %v1022_v42 = vsel %vm112_vm2, %v1545_v2, %v1352_v38 }
 0x91b   :  { %v889_v50 = vsel %vm112_vm2, %v1394_v9, 0.0  ;;  %v1355_v37 = vpop.permute.xlu1 %1354 }
 0x91c   :  { %890 = vadd.xlane.f32.xlu0 %v889_v50  ;;  %v1357_v39 = vunpack.i.h.bf16 %v1355_v37  ;;  %v1356_v40 = vunpack.i.l.bf16 %v1355_v37 }
 0x91e   :  { %v1396_v54 = vpop.eup %1395  ;;  %v1025_v47 = vsel %vm1023_vm5, %v1022_v42, %v1357_v39 }
 0x91f   :  { %v892_v55 = vsel %vm112_vm2, %v1396_v54, 0.0 }
 0x920   :  { %893 = vadd.xlane.f32.xlu0 %v892_v55 }
 0x936   :  { %949 = vrot.lane.b32.xlu0 %v1490_v12, %s1417_s16  ;;  %v1366_v12 = vld [vmem:[%s1677_s3] sm:$0xff]  }
 0x9a9   :  { %v891_v15 = vpop.xlane.xlu0 %890 }
 0x9aa   :  { %1397 = vrcp.f32 %v891_v15 }
 0x9ad   :  { %v894_v16 = vpop.xlane.xlu0 %893 }
 0x9ae   :  { %1399 = vrcp.f32 %v894_v16 }
 0x9b1   :  { %v950_v17 = vpop.permute.xlu0 %949 }
 0x9b2   :  { %v955_v18 = vsel %vm239_vm4, %v950_v17, 0 }
 0x9b3   :  { %1319 = vmatpush3.bf16.msra.mxu0 %v955_v18  ;;  %v1180_v18 = vld [vmem:[%s1679_s5] ss:$0 sm:$0xff] }
 0x9b4   :  { %v1398_v19 = vpop.eup %1397 }
 0x9b5   :  { %v897_v21 = vmul.f32 %v1398_v19, %v1394_v9 }
 0x9b7   :  { %v899_v22 = vpack.c.bf16 %v897_v21, %v897_v21 }
 0x9b8   :  { %v1400_v23 = vpop.eup %1399 }
 0x9b9   :  { %v898_v24 = vmul.f32 %v1400_v23, %v1396_v54  ;;  %1315 = vmatmul.mubr.msk.bf16.vlgmr.msra.gmra.mrb[28].mxu1 %vm112_vm2, %v899_v22  ;;  %v1181_v22 = vld [vmem:[%s1680_s6] ss:$0 sm:$0xff] }
 0x9ba   :  { %1328 = vmatprep.mubr.msk.bf16.mxu1 %vm1406_vm0, %v1405_v0  ;;  %1325 = vmatpush3.bf16.msra.mxu1 %v1366_v12 }
 0x9bb   :  { %v900_v25 = vpack.c.bf16 %v898_v24, %v898_v24  ;;  %1326 = vmatprep.subr.bf16.mxu1 %v1405_v0  ;;  %v1351_v0 = vunpack.i.l.bf16 %v1350_v36 }
 0x9bd   :  { %1321 = vmatmul.mubr.msk.bf16.vlgmr.msra.gmra.mrb[32].mxu0 %vm112_vm2, %v900_v25  ;;  %v1021_v43 = vsel %vm112_vm2, %v1543_v61, %v1351_v0  ;;  %v1098_v61 = vunpack.c.h.bf16 %v1476_v3 }
 0x9be   :  { %1327 = vmatpush3.bf16.msra.mxu1 %v1367_v26  ;;  %v1024_v46 = vsel %vm1023_vm5, %v1021_v43, %v1356_v40 }
 0xa8c   :  { %v943_v27 = vpop.f32.mrb[28].mxu1 }
 0xa8d   :  { %v1316_v28 = vpop.f32.mrb[29].mxu1 }
 0xa8e   :  { %v946_v29 = vpop.f32.mrb[30].mxu1 }
 0xa8f   :  { %v1317_v30 = vpop.f32.mrb[31].mxu1 }
 0xa90   :  { %v991_v31 = vpop.f32.mrb[32].mxu0 }
 0xa91   :  { %v1358_v32 = vpack.i.bf16 %v991_v31, %v943_v27  ;;  %v1322_v33 = vpop.f32.mrb[33].mxu0 }
 0xa92   :  { %v994_v34 = vpop.f32.mrb[34].mxu0 }
 0xa93   :  { %1359 = vrot.lane.b32.xlu0 %v1358_v32, %s1420_s23  ;;  %v1323_v35 = vpop.f32.mrb[35].mxu0 }
 0xb05   :  { %v1360_v41 = vpop.permute.xlu0 %1359 }
 0xb06   :  { %v1362_v44 = vunpack.i.h.bf16 %v1360_v41  ;;  %v1361_v45 = vunpack.i.l.bf16 %v1360_v41 }
 0xb08   :  { %v1028_v48 = vsel %vm1026_vm6, %v1025_v47, %v1362_v44  ;;  %v1027_v49 = vsel %vm1026_vm6, %v1024_v46, %v1361_v45 }
 0xb09   :  { %v1029_v51 = vpack.c.bf16 %v1028_v48, %v1027_v49 }
 0xb0b   :  { %1329 = vmatmul.mubr.msk.bf16.vlgmr.msra.gmra.mrb[32].mxu1 %vm57_vm1, %v1029_v51 }
 0xbde   :  { %v1090_v56 = vpop.f32.mrb[32].mxu1 }
 0xbdf   :  { %v1091_v2 = vadd.f32 %v1176_v52, %v1090_v56  ;;  %v1330_v57 = vpop.f32.mrb[33].mxu1 }
 0xbe0   :  { %v1093_v58 = vpop.f32.mrb[34].mxu1 }
 0xbe1   :  { %v1094_v59 = vadd.f32 %v1176_v52, %v1093_v58  ;;  %v1331_v60 = vpop.f32.mrb[35].mxu1  ;;  %v1099_v62 = vadd.f32 %v1097_v53, %v1091_v2 }
 0xbe3   :  { %v1103_v63 = vsel %vm57_vm1, %v1099_v62, 0.0  ;;  %v1100_v1 = vadd.f32 %v1098_v61, %v1094_v59 }
 0xbe4   :  { %1104 = vadd.xlane.f32.xlu1 %v1103_v63 }
 0xbe5   :  { %v1106_v4 = vsel %vm57_vm1, %v1100_v1, 0.0 }
 0xbe6   :  { %1107 = vadd.xlane.f32.xlu0 %v1106_v4 }
 0xc71   :  { %v1105_v5 = vpop.xlane.xlu1 %1104 }
 0xc72   :  { %v1110_v6 = vmul.f32 0.03125, %v1105_v5 }
 0xc73   :  { %v1108_v7 = vpop.xlane.xlu0 %1107 }
 0xc74   :  { %v1112_v20 = vsub.f32 %v1099_v62, %v1110_v6  ;;  %v1111_v8 = vmul.f32 0.03125, %v1108_v7 }
 0xc76   :  { %v1113_v10 = vsub.f32 %v1100_v1, %v1111_v8  ;;  %v1114_v11 = vmul.f32 %v1112_v20, %v1112_v20 }
 0xc78   :  { %v1116_v3 = vsel %vm57_vm1, %v1114_v11, 0.0  ;;  %v1115_v13 = vmul.f32 %v1113_v10, %v1113_v10 }
 0xc79   :  { %1117 = vadd.xlane.f32.xlu0 %v1116_v3 }
 0xc7a   :  { %v1119_v14 = vsel %vm57_vm1, %v1115_v13, 0.0 }
 0xc7b   :  { %1120 = vadd.xlane.f32.xlu1 %v1119_v14 }
 0xd06   :  { %v1118_v9 = vpop.xlane.xlu0 %1117 }
 0xd07   :  { %v1122_v50 = vmul.f32 0.03125, %v1118_v9 }
 0xd08   :  { %v1121_v54 = vpop.xlane.xlu1 %1120 }
 0xd09   :  { %v1124_v55 = vadd.f32 1e-05, %v1122_v50  ;;  %v1123_v15 = vmul.f32 0.03125, %v1121_v54 }
 0xd0b   :  { %1401 = vrsqrt.f32 %v1124_v55  ;;  %v1125_v16 = vadd.f32 1e-05, %v1123_v15 }
 0xd0d   :  { %1403 = vrsqrt.f32 %v1125_v16 }
 0xd15   :  { %v1402_v17 = vpop.eup %1401 }
 0xd16   :  { %v1128_v19 = vmul.f32 %v1402_v17, %v1112_v20 }
 0xd17   :  { %v1404_v21 = vpop.eup %1403 }
 0xd18   :  { %v1136_v23 = vmul.f32 %v1180_v18, %v1128_v19  ;;  %v1129_v24 = vmul.f32 %v1404_v21, %v1113_v10 }
 0xd1a   :  { %v1144_v25 = vadd.f32 %v1181_v22, %v1136_v23  ;;  %v1137_v12 = vmul.f32 %v1180_v18, %v1129_v24 }
 0xd1c   :  { %v1146_v26 = vpack.c.bf16 %v1144_v25, %v1144_v25  ;;  %v1145_v27 = vadd.f32 %v1181_v22, %v1137_v12 }
 0xd1e   :  { %1149 = vst.msk [vmem:[%s1681_s7] sm:$0xf] %vm1148_vm7, %v1146_v26  ;;  %v1147_v28 = vpack.c.bf16 %v1145_v27, %v1145_v27 }
 0xd20   :  { %1150 = vst.msk [vmem:[%s1681_s7 + $0x4] sm:$0xf] %vm1148_vm7, %v1147_v28 }

</bundles_post_ra>
